<compile_context>
chip_gen: v7x
topology: tpu7x:2x2x1
jax: 0.10.0
libtpu: 0.0.40
codegen_flags: <defaults>
</compile_context>

<pallas_src>
import math
from functools import partial

import numpy as np
import jax
import jax.numpy as jnp
from jax.experimental import pallas as pl
from jax.experimental.pallas import tpu as pltpu  # noqa: F401  (kept for TPU-specific params if needed)

# ----------------------------- configuration --------------------------------
D_MODEL = 32
D_STATE = 16
D_CONV = 4
EXPAND = 2
D_INNER = EXPAND * D_MODEL            # 64
DT_RANK = math.ceil(D_MODEL / 16)     # 2
BATCH = 2
SEQLEN = 8


def _sigmoid(x):
    # exact, numerically-stable sigmoid (review: no approx reciprocal).
    ex = jnp.exp(-jnp.abs(x))
    pos = 1.0 / (1.0 + ex)
    return jnp.where(x >= 0, pos, 1.0 - pos)


def _silu(x):
    return x * _sigmoid(x)


def _softplus(x):
    # stable softplus: max(x, 0) + log(1 + exp(-|x|)); no overflow and much
    # better behaved for large-negative x than log(1 + exp(x)).
    return jnp.maximum(x, 0.0) + jnp.log(1.0 + jnp.exp(-jnp.abs(x)))


# ------------------------------- the kernel ---------------------------------
def mamba_kernel(h_ref, xt_ref, slabA_ref, slabB_ref, slabC_ref,
                 cshift_ref, eexp_ref, sel_ref, atile_ref, ptile_ref,
                 cmask_ref, out_ref, *, batch, seqlen):
    B, L = batch, seqlen
    K, R, N, D = D_CONV, DT_RANK, D_STATE, D_INNER
    dm = h_ref.shape[1]
    BN = B * N

    h = h_ref[...]                                        # (B*L, dm)
    xt = xt_ref[...]                                      # (B*L, dm)

    # ---- parameter-slab windows (8-row / 128-lane aligned section starts) ---
    conv_taps = slabA_ref[pl.ds(0, K), :]                 # (K, D)
    conv_b = slabA_ref[pl.ds(4, 1), :]                    # (1, D)
    dt_bias = slabA_ref[pl.ds(5, 1), :]                   # (1, D)
    d_param = slabA_ref[pl.ds(6, 1), :]                   # (1, D)
    w_dtT = slabA_ref[pl.ds(8, R), :]                     # (R, D)

    w_inT = slabB_ref[pl.ds(0, dm), pl.ds(0, 2 * D)]      # (dm, 2D)
    wgT = slabB_ref[pl.ds(0, dm), pl.ds(2 * D, R + 2 * N)]    # (dm, R+2N)
    bg = slabB_ref[pl.ds(dm, 1), pl.ds(2 * D, R + 2 * N)]     # (1, R+2N)

    w_xprojT = slabC_ref[:, pl.ds(0, R + 2 * N)]          # (D, R+2N)
    w_outT = slabC_ref[:, pl.ds(128, dm)]                 # (D, dm), lane-128 aligned

    # ---- in_proj: one fused (B*L, dm) x (dm, 2D) matmul ----------------------
    xz = jnp.dot(h, w_inT, preferred_element_type=jnp.float32)     # (B*L, 2D)
    x = xz[:, :D]
    z = xz[:, D:]

    # ---- causal depthwise conv1d (+ bias, SiLU): ONE matmul ------------------
    # cshift is a host-built block-causal 0/1 shift matrix (B*L, K*B*L); the K
    # taps are stacked (pre-scaled by their per-channel weights) on the sublane
    # axis, so the whole conv is a single MXU push.
    xs = jnp.concatenate([x * conv_taps[w:w + 1, :] for w in range(K)], axis=0)  # (K*B*L, D)
    xc = jnp.dot(cshift_ref[...], xs, preferred_element_type=jnp.float32) + conv_b
    xc = _silu(xc)

    # ---- text gate + fused x_proj (dt | B | C) -------------------------------
    gate = _sigmoid(jnp.dot(xt, wgT, preferred_element_type=jnp.float32) + bg)   # (B*L, R+2N)
    xdbl = jnp.dot(xc, w_xprojT, preferred_element_type=jnp.float32) * gate      # (B*L, R+2N)
    dt_low = xdbl[:, :R]                                  # (B*L, R)
    Bm = xdbl[:, R:R + N]                                 # (B*L, N)
    Cm = xdbl[:, R + N:R + 2 * N]                         # (B*L, N)

    # ---- dt_proj + softplus(delta + delta_bias) -------------------------------
    delta = _softplus(jnp.dot(dt_low, w_dtT, preferred_element_type=jnp.float32)
                      + dt_bias)                          # (B*L, D)
    du = delta * xc                                       # (B*L, D)

    # ---- build ALL scan operands OFF the serial chain -------------------------
    # state rows are laid out (t, b, n): row = t*B*N + b*N + n.
    E = eexp_ref[...]                                     # (L*BN, B*L) one-hot row expansion
    expanded = jnp.dot(E, jnp.concatenate([delta, du], axis=1),
                       preferred_element_type=jnp.float32)           # (L*BN, 2D)
    delta_e = expanded[:, :D]
    du_e = expanded[:, D:]
    dA_all = jnp.exp(delta_e * atile_ref[...])            # (L*BN, D): ONE EUP pass for all steps
    t1 = jnp.dot(E, Bm, preferred_element_type=jnp.float32)          # (L*BN, N)
    b_col = jnp.sum(t1 * sel_ref[...], axis=1, keepdims=True)        # (L*BN, 1): B[b,t,n] per row
    dBu_all = du_e * b_col                                # (L*BN, D)

    # ---- serial recurrence: pure VPU fused multiply-add on a (B*N, D) state ---
    # TODO(synk): replace the full unroll with lax.fori_loop + L-tiled grid for
    # real prefill lengths.
    state = jnp.zeros((BN, D), jnp.float32)
    states = []
    for t in range(L):
        s0 = t * BN
        state = dA_all[s0:s0 + BN, :] * state + dBu_all[s0:s0 + BN, :]
        states.append(state)
    stacked = jnp.concatenate(states, axis=0)             # (L*BN, D)

    # ---- C-contraction: ONE (B*L, L*BN) x (L*BN, D) matmul after the scan -----
    c_big = jnp.dot(Cm, ptile_ref[...], preferred_element_type=jnp.float32) * cmask_ref[...]
    y = jnp.dot(c_big, stacked, preferred_element_type=jnp.float32)  # (B*L, D)

    y = y + d_param * xc                                  # + D * u
    y = y * _silu(z)                                      # * silu(z)

    # ---- out_proj --------------------------------------------------------------
    out_ref[...] = jnp.dot(y, w_outT, preferred_element_type=jnp.float32)


# --------------------- host-built static index matrices -----------------------
def _static_matrices(B, L, N, K):
    BL, BN = B * L, B * N
    rows = np.arange(L * BN)
    t_idx = rows // BN
    b_idx = (rows // N) % B
    n_idx = rows % N

    # one-hot expansion: state row (t, b, n) -> sequence row r = b*L + t
    e_exp = np.zeros((L * BN, BL), np.float32)
    e_exp[rows, b_idx * L + t_idx] = 1.0

    # lane selection: state row (t, b, n) -> lane n
    sel = np.zeros((L * BN, N), np.float32)
    sel[rows, n_idx] = 1.0

    cols = rows
    # lane-tile matrix: (N, L*BN), p_tile[n, c] = 1 iff c % N == n
    p_tile = (cols[None, :] % N == np.arange(N)[:, None]).astype(np.float32)

    r = np.arange(BL)[:, None]
    c = cols[None, :]
    # block-diagonal output mask: row r=(b,t) keeps state columns with the same (t, b)
    c_mask = ((c // BN == r % L) & ((c // N) % B == r // L)).astype(np.float32)

    # causal depthwise-conv shift matrix: (BL, K*BL)
    cc = np.arange(K * BL)[None, :]
    shift = (K - 1) - cc // BL
    src = cc % BL
    conv_shift = ((src == r - shift) & ((r % L) >= shift)).astype(np.float32)
    return conv_shift, e_exp, sel, p_tile, c_mask


# ------------------------------- wrapper -------------------------------------
def mamba_pallas(hidden, x_text, p):
    B, L, dm = hidden.shape
    D, R, N, K = D_INNER, DT_RANK, D_STATE, D_CONV
    BL, BN = B * L, B * N
    f32 = jnp.float32

    conv_shift, e_exp, sel, p_tile, c_mask = _static_matrices(B, L, N, K)

    # ---- parameter slabs: every kernel-side slice starts 8-row / 128-lane aligned
    slabA = jnp.concatenate([
        p["conv_w"][:, 0, :].T,                    # rows 0..3   (K, D) conv taps
        p["conv_b"][None, :],                      # row  4
        p["dt_bias"][None, :],                     # row  5
        p["d_param"][None, :],                     # row  6
        jnp.zeros((1, D), f32),                    # row  7      pad
        p["w_dtproj"].T,                           # rows 8..9   (R, D)
        jnp.zeros((8 - R, D), f32),                # rows 10..15 pad
    ], axis=0).astype(f32)                          # (16, 64)

    slabB = jnp.concatenate([
        jnp.concatenate([p["w_in"].T, p["wg"].T], axis=1),                       # (dm, 2D+R+2N)
        jnp.concatenate([jnp.zeros((1, 2 * D), f32), p["bg"][None, :]], axis=1),  # (1,  2D+R+2N)
    ], axis=0).astype(f32)                          # (33, 162)   w_inT @ lane 0, wgT/bg @ lane 128

    slabC = jnp.concatenate([
        p["w_xproj"].T,                             # lanes 0..33    (D, R+2N)
        jnp.zeros((D, 128 - (R + 2 * N)), f32),     # pad so w_out starts at lane 128
        p["w_out"].T,                               # lanes 128..159 (D, dm)
    ], axis=1).astype(f32)                          # (64, 160)

    # -A tiled onto the (t, b, n) state-row layout (static, so built host-side).
    a_tiled = jnp.tile(-jnp.exp(p["a_log"]).T, (BL, 1)).astype(f32)   # (L*BN, D)

    h2 = hidden.reshape(BL, dm).astype(f32)
    xt_rep = jnp.repeat(x_text.astype(f32), L, axis=0)                # (BL, dm): row b*L+l -> x_text[b]

    out = pl.pallas_call(
        partial(mamba_kernel, batch=B, seqlen=L),
        out_shape=jax.ShapeDtypeStruct((BL, dm), f32),
    )(h2, xt_rep, slabA, slabB, slabC,
      jnp.asarray(conv_shift), jnp.asarray(e_exp), jnp.asarray(sel),
      a_tiled, jnp.asarray(p_tile), jnp.asarray(c_mask))
    return out.reshape(B, L, dm)


# --------------------------- deterministic init -------------------------------
def init_params(key):
    ks = jax.random.split(key, 9)

    def uni(k, shape, bound):
        return jax.random.uniform(k, shape, jnp.float32, -bound, bound)

    p = {}
    p["w_in"] = uni(ks[0], (2 * D_INNER, D_MODEL), 1.0 / math.sqrt(D_MODEL))
    p["conv_w"] = uni(ks[1], (D_INNER, 1, D_CONV), 1.0 / math.sqrt(D_CONV))
    p["conv_b"] = uni(ks[2], (D_INNER,), 1.0 / math.sqrt(D_CONV))
    p["w_xproj"] = uni(ks[3], (DT_RANK + 2 * D_STATE, D_INNER), 1.0 / math.sqrt(D_INNER))
    p["w_dtproj"] = uni(ks[4], (D_INNER, DT_RANK), DT_RANK ** -0.5)
    dt = jnp.exp(jax.random.uniform(ks[5], (D_INNER,), jnp.float32)
                 * (math.log(0.1) - math.log(0.001)) + math.log(0.001))
    dt = jnp.maximum(dt, 1e-4)
    p["dt_bias"] = dt + jnp.log(-jnp.expm1(-dt))   # inv_dt, so softplus(inv_dt) == dt
    p["a_log"] = jnp.log(jnp.broadcast_to(
        jnp.arange(1, D_STATE + 1, dtype=jnp.float32), (D_INNER, D_STATE)))
    p["d_param"] = jnp.ones((D_INNER,), jnp.float32)
    p["w_out"] = uni(ks[6], (D_MODEL, D_INNER), 1.0 / math.sqrt(D_INNER))
    p["wg"] = uni(ks[7], (DT_RANK + 2 * D_STATE, D_MODEL), 1.0 / math.sqrt(D_MODEL))
    p["bg"] = uni(ks[8], (DT_RANK + 2 * D_STATE,), 1.0 / math.sqrt(D_MODEL))
    return p


# --------------------------- pure-JAX reference -------------------------------
def mamba_reference(hidden, x_text, p):
    B, L, _ = hidden.shape
    xz = jnp.einsum("bld,ed->ble", hidden, p["w_in"])
    x, z = xz[..., :D_INNER], xz[..., D_INNER:]
    xp = jnp.pad(x, ((0, 0), (D_CONV - 1, 0), (0, 0)))
    w2 = p["conv_w"][:, 0, :]                              # (d_inner, K)
    xc = jnp.zeros_like(x)
    for w in range(D_CONV):
        xc = xc + xp[:, w:w + L, :] * w2[:, w][None, None, :]
    xc = xc + p["conv_b"][None, None, :]
    xc = jax.nn.silu(xc)
    x_dbl = jnp.einsum("bld,rd->blr", xc, p["w_xproj"])
    gate = jax.nn.sigmoid(x_text @ p["wg"].T + p["bg"])    # (B, R + 2N)
    x_dbl = x_dbl * gate[:, None, :]
    dt_low = x_dbl[..., :DT_RANK]
    Bm = x_dbl[..., DT_RANK:DT_RANK + D_STATE]
    Cm = x_dbl[..., DT_RANK + D_STATE:]
    delta = jax.nn.softplus(jnp.einsum("blr,dr->bld", dt_low, p["w_dtproj"])
                            + p["dt_bias"][None, None, :])
    A = -jnp.exp(p["a_log"])
    state = jnp.zeros((B, D_INNER, D_STATE), jnp.float32)
    ys = []
    for t in range(L):
        dA = jnp.exp(delta[:, t, :, None] * A[None, :, :])
        dBu = (delta[:, t, :] * xc[:, t, :])[:, :, None] * Bm[:, t, None, :]
        state = dA * state + dBu
        ys.append(jnp.sum(state * Cm[:, t, None, :], axis=-1))
    y = jnp.stack(ys, axis=1)                              # (B, L, d_inner)
    y = y + xc * p["d_param"][None, None, :]
    y = y * jax.nn.silu(z)
    return jnp.einsum("bld,od->blo", y, p["w_out"])


if __name__ == "__main__":
    key = jax.random.PRNGKey(0)
    kp, kh, kt = jax.random.split(key, 3)
    params = init_params(kp)
    hidden = jax.random.normal(kh, (BATCH, SEQLEN, D_MODEL), jnp.float32)
    x_text = jax.random.normal(kt, (BATCH, D_MODEL), jnp.float32)

    out = jax.block_until_ready(mamba_pallas(hidden, x_text, params))
    assert out.shape == (BATCH, SEQLEN, D_MODEL)

    ref = jax.block_until_ready(mamba_reference(hidden, x_text, params))
    np.testing.assert_allclose(np.asarray(out), np.asarray(ref), rtol=1e-2, atol=1e-2)

    print("KERNEL_OK")
</pallas_src>

<mosaic_0001>
module attributes {stable_mosaic.version = 11 : i64} {
  func.func @mamba_kernel(%arg0: memref<16x32xf32, #tpu.memory_space<vmem>>, %arg1: memref<16x32xf32, #tpu.memory_space<vmem>>, %arg2: memref<16x64xf32, #tpu.memory_space<vmem>>, %arg3: memref<33x162xf32, #tpu.memory_space<vmem>>, %arg4: memref<64x160xf32, #tpu.memory_space<vmem>>, %arg5: memref<16x64xf32, #tpu.memory_space<vmem>>, %arg6: memref<256x16xf32, #tpu.memory_space<vmem>>, %arg7: memref<256x16xf32, #tpu.memory_space<vmem>>, %arg8: memref<256x64xf32, #tpu.memory_space<vmem>>, %arg9: memref<16x256xf32, #tpu.memory_space<vmem>>, %arg10: memref<16x256xf32, #tpu.memory_space<vmem>>, %arg11: memref<16x32xf32, #tpu.memory_space<vmem>>) attributes {dimension_semantics = [], scalar_prefetch = 0 : i64, scratch_operands = 0 : i64, tpu.core_type = #tpu.core_type<tc>} {
    %c0 = arith.constant 0 : index
    %c0_0 = arith.constant 0 : index
    %0 = vector.load %arg0[%c0, %c0_0] : memref<16x32xf32, #tpu.memory_space<vmem>>, vector<16x32xf32>
    %c0_1 = arith.constant 0 : index
    %c0_2 = arith.constant 0 : index
    %1 = vector.load %arg1[%c0_1, %c0_2] : memref<16x32xf32, #tpu.memory_space<vmem>>, vector<16x32xf32>
    %c0_3 = arith.constant 0 : index
    %c0_4 = arith.constant 0 : index
    %2 = vector.load %arg2[%c0_3, %c0_4] : memref<16x64xf32, #tpu.memory_space<vmem>>, vector<4x64xf32>
    %c4 = arith.constant 4 : index
    %c0_5 = arith.constant 0 : index
    %3 = vector.load %arg2[%c4, %c0_5] : memref<16x64xf32, #tpu.memory_space<vmem>>, vector<1x64xf32>
    %c5 = arith.constant 5 : index
    %c0_6 = arith.constant 0 : index
    %4 = vector.load %arg2[%c5, %c0_6] : memref<16x64xf32, #tpu.memory_space<vmem>>, vector<1x64xf32>
    %c6 = arith.constant 6 : index
    %c0_7 = arith.constant 0 : index
    %5 = vector.load %arg2[%c6, %c0_7] : memref<16x64xf32, #tpu.memory_space<vmem>>, vector<1x64xf32>
    %c8 = arith.constant 8 : index
    %c0_8 = arith.constant 0 : index
    %6 = vector.load %arg2[%c8, %c0_8] : memref<16x64xf32, #tpu.memory_space<vmem>>, vector<2x64xf32>
    %c0_9 = arith.constant 0 : index
    %c0_10 = arith.constant 0 : index
    %7 = vector.load %arg3[%c0_9, %c0_10] : memref<33x162xf32, #tpu.memory_space<vmem>>, vector<32x128xf32>
    %c0_11 = arith.constant 0 : index
    %c128 = arith.constant 128 : index
    %8 = vector.load %arg3[%c0_11, %c128] : memref<33x162xf32, #tpu.memory_space<vmem>>, vector<32x34xf32>
    %c32 = arith.constant 32 : index
    %c128_12 = arith.constant 128 : index
    %9 = vector.load %arg3[%c32, %c128_12] : memref<33x162xf32, #tpu.memory_space<vmem>>, vector<1x34xf32>
    %c0_13 = arith.constant 0 : index
    %c0_14 = arith.constant 0 : index
    %10 = vector.load %arg4[%c0_13, %c0_14] : memref<64x160xf32, #tpu.memory_space<vmem>>, vector<64x34xf32>
    %c0_15 = arith.constant 0 : index
    %c128_16 = arith.constant 128 : index
    %11 = vector.load %arg4[%c0_15, %c128_16] : memref<64x160xf32, #tpu.memory_space<vmem>>, vector<64x32xf32>
    %cst = arith.constant dense<0.000000e+00> : vector<16x128xf32>
    %12 = tpu.matmul %0, %7, %cst {dimension_numbers = #tpu.dot_dimension_numbers<[1], [0], [0], [1], [0, 0, 1, 1], [], []>} : vector<16x32xf32>, vector<32x128xf32>, vector<16x128xf32> -> vector<16x128xf32>
    %13 = vector.extract_strided_slice %12 {offsets = [0, 0], sizes = [16, 64], strides = [1, 1]} : vector<16x128xf32> to vector<16x64xf32>
    %14 = vector.extract_strided_slice %12 {offsets = [0, 64], sizes = [16, 64], strides = [1, 1]} : vector<16x128xf32> to vector<16x64xf32>
    %15 = vector.extract_strided_slice %2 {offsets = [0, 0], sizes = [1, 64], strides = [1, 1]} : vector<4x64xf32> to vector<1x64xf32>
    %16 = vector.broadcast %15 : vector<1x64xf32> to vector<16x64xf32>
    %17 = arith.mulf %13, %16 : vector<16x64xf32>
    %18 = vector.extract_strided_slice %2 {offsets = [1, 0], sizes = [1, 64], strides = [1, 1]} : vector<4x64xf32> to vector<1x64xf32>
    %19 = vector.broadcast %18 : vector<1x64xf32> to vector<16x64xf32>
    %20 = arith.mulf %13, %19 : vector<16x64xf32>
    %21 = vector.extract_strided_slice %2 {offsets = [2, 0], sizes = [1, 64], strides = [1, 1]} : vector<4x64xf32> to vector<1x64xf32>
    %22 = vector.broadcast %21 : vector<1x64xf32> to vector<16x64xf32>
    %23 = arith.mulf %13, %22 : vector<16x64xf32>
    %24 = vector.extract_strided_slice %2 {offsets = [3, 0], sizes = [1, 64], strides = [1, 1]} : vector<4x64xf32> to vector<1x64xf32>
    %25 = vector.broadcast %24 : vector<1x64xf32> to vector<16x64xf32>
    %26 = arith.mulf %13, %25 : vector<16x64xf32>
    %27 = tpu.concatenate %17, %20, %23, %26 in 0 : vector<16x64xf32>, vector<16x64xf32>, vector<16x64xf32>, vector<16x64xf32> -> vector<64x64xf32>
    %c0_17 = arith.constant 0 : index
    %c0_18 = arith.constant 0 : index
    %28 = vector.load %arg5[%c0_17, %c0_18] : memref<16x64xf32, #tpu.memory_space<vmem>>, vector<16x64xf32>
    %cst_19 = arith.constant dense<0.000000e+00> : vector<16x64xf32>
    %29 = tpu.matmul %28, %27, %cst_19 {dimension_numbers = #tpu.dot_dimension_numbers<[1], [0], [0], [1], [0, 0, 1, 1], [], []>} : vector<16x64xf32>, vector<64x64xf32>, vector<16x64xf32> -> vector<16x64xf32>
    %30 = vector.broadcast %3 : vector<1x64xf32> to vector<16x64xf32>
    %31 = arith.addf %29, %30 : vector<16x64xf32>
    %32 = math.absf %31 : vector<16x64xf32>
    %cst_20 = arith.constant 0.000000e+00 : f32
    %33 = vector.broadcast %cst_20 : f32 to vector<16x64xf32>
    %34 = arith.subf %33, %32 : vector<16x64xf32>
    %35 = math.exp %34 : vector<16x64xf32>
    %cst_21 = arith.constant 1.000000e+00 : f32
    %36 = vector.broadcast %cst_21 : f32 to vector<16x64xf32>
    %37 = arith.addf %36, %35 : vector<16x64xf32>
    %cst_22 = arith.constant 1.000000e+00 : f32
    %38 = vector.broadcast %cst_22 : f32 to vector<16x64xf32>
    %39 = arith.divf %38, %37 : vector<16x64xf32>
    %cst_23 = arith.constant 0.000000e+00 : f32
    %40 = vector.broadcast %cst_23 : f32 to vector<16x64xf32>
    %41 = arith.cmpf oge, %31, %40 : vector<16x64xf32>
    %cst_24 = arith.constant 1.000000e+00 : f32
    %42 = vector.broadcast %cst_24 : f32 to vector<16x64xf32>
    %43 = arith.subf %42, %39 : vector<16x64xf32>
    %44 = arith.select %41, %39, %43 : vector<16x64xi1>, vector<16x64xf32>
    %45 = arith.mulf %31, %44 : vector<16x64xf32>
    %cst_25 = arith.constant dense<0.000000e+00> : vector<16x34xf32>
    %46 = tpu.matmul %1, %8, %cst_25 {dimension_numbers = #tpu.dot_dimension_numbers<[1], [0], [0], [1], [0, 0, 1, 1], [], []>} : vector<16x32xf32>, vector<32x34xf32>, vector<16x34xf32> -> vector<16x34xf32>
    %47 = vector.broadcast %9 : vector<1x34xf32> to vector<16x34xf32>
    %48 = arith.addf %46, %47 : vector<16x34xf32>
    %49 = math.absf %48 : vector<16x34xf32>
    %cst_26 = arith.constant 0.000000e+00 : f32
    %50 = vector.broadcast %cst_26 : f32 to vector<16x34xf32>
    %51 = arith.subf %50, %49 : vector<16x34xf32>
    %52 = math.exp %51 : vector<16x34xf32>
    %cst_27 = arith.constant 1.000000e+00 : f32
    %53 = vector.broadcast %cst_27 : f32 to vector<16x34xf32>
    %54 = arith.addf %53, %52 : vector<16x34xf32>
    %cst_28 = arith.constant 1.000000e+00 : f32
    %55 = vector.broadcast %cst_28 : f32 to vector<16x34xf32>
    %56 = arith.divf %55, %54 : vector<16x34xf32>
    %cst_29 = arith.constant 0.000000e+00 : f32
    %57 = vector.broadcast %cst_29 : f32 to vector<16x34xf32>
    %58 = arith.cmpf oge, %48, %57 : vector<16x34xf32>
    %cst_30 = arith.constant 1.000000e+00 : f32
    %59 = vector.broadcast %cst_30 : f32 to vector<16x34xf32>
    %60 = arith.subf %59, %56 : vector<16x34xf32>
    %61 = arith.select %58, %56, %60 : vector<16x34xi1>, vector<16x34xf32>
    %cst_31 = arith.constant dense<0.000000e+00> : vector<16x34xf32>
    %62 = tpu.matmul %45, %10, %cst_31 {dimension_numbers = #tpu.dot_dimension_numbers<[1], [0], [0], [1], [0, 0, 1, 1], [], []>} : vector<16x64xf32>, vector<64x34xf32>, vector<16x34xf32> -> vector<16x34xf32>
    %63 = arith.mulf %62, %61 : vector<16x34xf32>
    %64 = vector.extract_strided_slice %63 {offsets = [0, 0], sizes = [16, 2], strides = [1, 1]} : vector<16x34xf32> to vector<16x2xf32>
    %65 = vector.extract_strided_slice %63 {offsets = [0, 2], sizes = [16, 16], strides = [1, 1]} : vector<16x34xf32> to vector<16x16xf32>
    %66 = vector.extract_strided_slice %63 {offsets = [0, 18], sizes = [16, 16], strides = [1, 1]} : vector<16x34xf32> to vector<16x16xf32>
    %cst_32 = arith.constant dense<0.000000e+00> : vector<16x64xf32>
    %67 = tpu.matmul %64, %6, %cst_32 {dimension_numbers = #tpu.dot_dimension_numbers<[1], [0], [0], [1], [0, 0, 1, 1], [], []>} : vector<16x2xf32>, vector<2x64xf32>, vector<16x64xf32> -> vector<16x64xf32>
    %68 = vector.broadcast %4 : vector<1x64xf32> to vector<16x64xf32>
    %69 = arith.addf %67, %68 : vector<16x64xf32>
    %cst_33 = arith.constant 0.000000e+00 : f32
    %70 = vector.broadcast %cst_33 : f32 to vector<16x64xf32>
    %71 = arith.maximumf %69, %70 : vector<16x64xf32>
    %72 = math.absf %69 : vector<16x64xf32>
    %cst_34 = arith.constant 0.000000e+00 : f32
    %73 = vector.broadcast %cst_34 : f32 to vector<16x64xf32>
    %74 = arith.subf %73, %72 : vector<16x64xf32>
    %75 = math.exp %74 : vector<16x64xf32>
    %cst_35 = arith.constant 1.000000e+00 : f32
    %76 = vector.broadcast %cst_35 : f32 to vector<16x64xf32>
    %77 = arith.addf %76, %75 : vector<16x64xf32>
    %78 = math.log %77 : vector<16x64xf32>
    %79 = arith.addf %71, %78 : vector<16x64xf32>
    %80 = arith.mulf %79, %45 : vector<16x64xf32>
    %c0_36 = arith.constant 0 : index
    %c0_37 = arith.constant 0 : index
    %81 = vector.load %arg6[%c0_36, %c0_37] : memref<256x16xf32, #tpu.memory_space<vmem>>, vector<256x16xf32>
    %82 = tpu.concatenate %79, %80 in 1 : vector<16x64xf32>, vector<16x64xf32> -> vector<16x128xf32>
    %cst_38 = arith.constant dense<0.000000e+00> : vector<256x128xf32>
    %83 = tpu.matmul %81, %82, %cst_38 {dimension_numbers = #tpu.dot_dimension_numbers<[1], [0], [0], [1], [0, 0, 1, 1], [], []>} : vector<256x16xf32>, vector<16x128xf32>, vector<256x128xf32> -> vector<256x128xf32>
    %84 = vector.extract_strided_slice %83 {offsets = [0, 0], sizes = [256, 64], strides = [1, 1]} : vector<256x128xf32> to vector<256x64xf32>
    %85 = vector.extract_strided_slice %83 {offsets = [0, 64], sizes = [256, 64], strides = [1, 1]} : vector<256x128xf32> to vector<256x64xf32>
    %c0_39 = arith.constant 0 : index
    %c0_40 = arith.constant 0 : index
    %86 = vector.load %arg8[%c0_39, %c0_40] : memref<256x64xf32, #tpu.memory_space<vmem>>, vector<256x64xf32>
    %87 = arith.mulf %84, %86 : vector<256x64xf32>
    %88 = math.exp %87 : vector<256x64xf32>
    %cst_41 = arith.constant dense<0.000000e+00> : vector<256x16xf32>
    %89 = tpu.matmul %81, %65, %cst_41 {dimension_numbers = #tpu.dot_dimension_numbers<[1], [0], [0], [1], [0, 0, 1, 1], [], []>} : vector<256x16xf32>, vector<16x16xf32>, vector<256x16xf32> -> vector<256x16xf32>
    %c0_42 = arith.constant 0 : index
    %c0_43 = arith.constant 0 : index
    %90 = vector.load %arg7[%c0_42, %c0_43] : memref<256x16xf32, #tpu.memory_space<vmem>>, vector<256x16xf32>
    %91 = arith.mulf %89, %90 : vector<256x16xf32>
    %cst_44 = arith.constant dense<0.000000e+00> : vector<256xf32>
    %92 = vector.multi_reduction <add>, %91, %cst_44 [1] : vector<256x16xf32> to vector<256xf32>
    %93 = vector.shape_cast %92 : vector<256xf32> to vector<256x1xf32>
    %94 = vector.broadcast %93 : vector<256x1xf32> to vector<256x64xf32>
    %95 = arith.mulf %85, %94 : vector<256x64xf32>
    %cst_45 = arith.constant 0.000000e+00 : f32
    %96 = vector.broadcast %cst_45 : f32 to vector<32x64xf32>
    %97 = vector.extract_strided_slice %88 {offsets = [0, 0], sizes = [32, 64], strides = [1, 1]} : vector<256x64xf32> to vector<32x64xf32>
    %98 = arith.mulf %97, %96 : vector<32x64xf32>
    %99 = vector.extract_strided_slice %95 {offsets = [0, 0], sizes = [32, 64], strides = [1, 1]} : vector<256x64xf32> to vector<32x64xf32>
    %100 = arith.addf %98, %99 : vector<32x64xf32>
    %101 = vector.extract_strided_slice %88 {offsets = [32, 0], sizes = [32, 64], strides = [1, 1]} : vector<256x64xf32> to vector<32x64xf32>
    %102 = arith.mulf %101, %100 : vector<32x64xf32>
    %103 = vector.extract_strided_slice %95 {offsets = [32, 0], sizes = [32, 64], strides = [1, 1]} : vector<256x64xf32> to vector<32x64xf32>
    %104 = arith.addf %102, %103 : vector<32x64xf32>
    %105 = vector.extract_strided_slice %88 {offsets = [64, 0], sizes = [32, 64], strides = [1, 1]} : vector<256x64xf32> to vector<32x64xf32>
    %106 = arith.mulf %105, %104 : vector<32x64xf32>
    %107 = vector.extract_strided_slice %95 {offsets = [64, 0], sizes = [32, 64], strides = [1, 1]} : vector<256x64xf32> to vector<32x64xf32>
    %108 = arith.addf %106, %107 : vector<32x64xf32>
    %109 = vector.extract_strided_slice %88 {offsets = [96, 0], sizes = [32, 64], strides = [1, 1]} : vector<256x64xf32> to vector<32x64xf32>
    %110 = arith.mulf %109, %108 : vector<32x64xf32>
    %111 = vector.extract_strided_slice %95 {offsets = [96, 0], sizes = [32, 64], strides = [1, 1]} : vector<256x64xf32> to vector<32x64xf32>
    %112 = arith.addf %110, %111 : vector<32x64xf32>
    %113 = vector.extract_strided_slice %88 {offsets = [128, 0], sizes = [32, 64], strides = [1, 1]} : vector<256x64xf32> to vector<32x64xf32>
    %114 = arith.mulf %113, %112 : vector<32x64xf32>
    %115 = vector.extract_strided_slice %95 {offsets = [128, 0], sizes = [32, 64], strides = [1, 1]} : vector<256x64xf32> to vector<32x64xf32>
    %116 = arith.addf %114, %115 : vector<32x64xf32>
    %117 = vector.extract_strided_slice %88 {offsets = [160, 0], sizes = [32, 64], strides = [1, 1]} : vector<256x64xf32> to vector<32x64xf32>
    %118 = arith.mulf %117, %116 : vector<32x64xf32>
    %119 = vector.extract_strided_slice %95 {offsets = [160, 0], sizes = [32, 64], strides = [1, 1]} : vector<256x64xf32> to vector<32x64xf32>
    %120 = arith.addf %118, %119 : vector<32x64xf32>
    %121 = vector.extract_strided_slice %88 {offsets = [192, 0], sizes = [32, 64], strides = [1, 1]} : vector<256x64xf32> to vector<32x64xf32>
    %122 = arith.mulf %121, %120 : vector<32x64xf32>
    %123 = vector.extract_strided_slice %95 {offsets = [192, 0], sizes = [32, 64], strides = [1, 1]} : vector<256x64xf32> to vector<32x64xf32>
    %124 = arith.addf %122, %123 : vector<32x64xf32>
    %125 = vector.extract_strided_slice %88 {offsets = [224, 0], sizes = [32, 64], strides = [1, 1]} : vector<256x64xf32> to vector<32x64xf32>
    %126 = arith.mulf %125, %124 : vector<32x64xf32>
    %127 = vector.extract_strided_slice %95 {offsets = [224, 0], sizes = [32, 64], strides = [1, 1]} : vector<256x64xf32> to vector<32x64xf32>
    %128 = arith.addf %126, %127 : vector<32x64xf32>
    %129 = tpu.concatenate %100, %104, %108, %112, %116, %120, %124, %128 in 0 : vector<32x64xf32>, vector<32x64xf32>, vector<32x64xf32>, vector<32x64xf32>, vector<32x64xf32>, vector<32x64xf32>, vector<32x64xf32>, vector<32x64xf32> -> vector<256x64xf32>
    %c0_46 = arith.constant 0 : index
    %c0_47 = arith.constant 0 : index
    %130 = vector.load %arg9[%c0_46, %c0_47] : memref<16x256xf32, #tpu.memory_space<vmem>>, vector<16x256xf32>
    %cst_48 = arith.constant dense<0.000000e+00> : vector<16x256xf32>
    %131 = tpu.matmul %66, %130, %cst_48 {dimension_numbers = #tpu.dot_dimension_numbers<[1], [0], [0], [1], [0, 0, 1, 1], [], []>} : vector<16x16xf32>, vector<16x256xf32>, vector<16x256xf32> -> vector<16x256xf32>
    %c0_49 = arith.constant 0 : index
    %c0_50 = arith.constant 0 : index
    %132 = vector.load %arg10[%c0_49, %c0_50] : memref<16x256xf32, #tpu.memory_space<vmem>>, vector<16x256xf32>
    %133 = arith.mulf %131, %132 : vector<16x256xf32>
    %cst_51 = arith.constant dense<0.000000e+00> : vector<16x64xf32>
    %134 = tpu.matmul %133, %129, %cst_51 {dimension_numbers = #tpu.dot_dimension_numbers<[1], [0], [0], [1], [0, 0, 1, 1], [], []>} : vector<16x256xf32>, vector<256x64xf32>, vector<16x64xf32> -> vector<16x64xf32>
    %135 = vector.broadcast %5 : vector<1x64xf32> to vector<16x64xf32>
    %136 = arith.mulf %135, %45 : vector<16x64xf32>
    %137 = arith.addf %134, %136 : vector<16x64xf32>
    %138 = math.absf %14 : vector<16x64xf32>
    %cst_52 = arith.constant 0.000000e+00 : f32
    %139 = vector.broadcast %cst_52 : f32 to vector<16x64xf32>
    %140 = arith.subf %139, %138 : vector<16x64xf32>
    %141 = math.exp %140 : vector<16x64xf32>
    %cst_53 = arith.constant 1.000000e+00 : f32
    %142 = vector.broadcast %cst_53 : f32 to vector<16x64xf32>
    %143 = arith.addf %142, %141 : vector<16x64xf32>
    %cst_54 = arith.constant 1.000000e+00 : f32
    %144 = vector.broadcast %cst_54 : f32 to vector<16x64xf32>
    %145 = arith.divf %144, %143 : vector<16x64xf32>
    %cst_55 = arith.constant 0.000000e+00 : f32
    %146 = vector.broadcast %cst_55 : f32 to vector<16x64xf32>
    %147 = arith.cmpf oge, %14, %146 : vector<16x64xf32>
    %cst_56 = arith.constant 1.000000e+00 : f32
    %148 = vector.broadcast %cst_56 : f32 to vector<16x64xf32>
    %149 = arith.subf %148, %145 : vector<16x64xf32>
    %150 = arith.select %147, %145, %149 : vector<16x64xi1>, vector<16x64xf32>
    %151 = arith.mulf %14, %150 : vector<16x64xf32>
    %152 = arith.mulf %137, %151 : vector<16x64xf32>
    %cst_57 = arith.constant dense<0.000000e+00> : vector<16x32xf32>
    %153 = tpu.matmul %152, %11, %cst_57 {dimension_numbers = #tpu.dot_dimension_numbers<[1], [0], [0], [1], [0, 0, 1, 1], [], []>} : vector<16x64xf32>, vector<64x32xf32>, vector<16x32xf32> -> vector<16x32xf32>
    %c0_58 = arith.constant 0 : index
    %c0_59 = arith.constant 0 : index
    %154 = vector.load %arg11[%c0_58, %c0_59] : memref<16x32xf32, #tpu.memory_space<vmem>>, vector<16x32xf32>
    tpu.vector_store %arg11[%c0_58, %c0_59], %153 {strides = array<i32>} : memref<16x32xf32, #tpu.memory_space<vmem>>, vector<16x32xf32>,
    return
  }
}

</mosaic_0001>

<bundles_post_ra>
// kernel: tpu_custom_call.1
= control target key start
LH: loop header
LB: loop body
LE: loop exit
PB: predicated region body
PF: predicated region fallthrough
CT: control target
= control target key end

     0   :  { %vm73_vm0 = vcmask 261120   ;;  %s3696_s0 = inlined_call_operand.vmem [shape: f32[16,32], index: 0, kind: input, shape index: {}]   ;;  %s3697_s1 = inlined_call_operand.vmem [shape: f32[16,32], index: 1, kind: input, shape index: {}]   ;;  %s3698_s2 = inlined_call_operand.vmem [shape: f32[16,64], index: 2, kind: input, shape index: {}]   ;;  %s3699_s3 = inlined_call_operand.vmem [shape: f32[33,162], index: 3, kind: input, shape index: {}]   ;;  %s3700_s4 = inlined_call_operand.vmem [shape: f32[64,160], index: 4, kind: input, shape index: {}]   ;;  %s3701_s5 = inlined_call_operand.vmem [shape: f32[16,64], index: 5, kind: input, shape index: {}]   ;;  %s3702_s6 = inlined_call_operand.vmem [shape: f32[256,16], index: 6, kind: input, shape index: {}]   ;;  %s3703_s7 = inlined_call_operand.vmem [shape: f32[256,16], index: 7, kind: input, shape index: {}]   ;;  %s3704_s8 = inlined_call_operand.vmem [shape: f32[256,64], index: 8, kind: input, shape index: {}]   ;;  %s3705_s9 = inlined_call_operand.vmem [shape: f32[16,256], index: 9, kind: input, shape index: {}]   ;;  %s3706_s10 = inlined_call_operand.vmem [shape: f32[16,256], index: 10, kind: input, shape index: {}]   ;;  %s3707_s11 = inlined_call_operand.hbm [shape: f32[16,32], index: 11, kind: output, shape index: {}]  }
   0x1   :  { %v48_v0 = vld [vmem:[%s3699_s3] sm:$0xff]  ;;  %v49_v1 = vld [vmem:[%s3699_s3 + $0x10] sm:$0xff] }
   0x2   :  { %v50_v2 = vld [vmem:[%s3699_s3 + $0x20] sm:$0xff]  ;;  %v2420_v3 = vpack.c.bf16 %v49_v1, %v48_v0  ;;  %v51_v4 = vld [vmem:[%s3699_s3 + $0x30] sm:$0xff] }
   0x3   :  { %v39_v5 = vld [vmem:[%s3696_s0] sm:$0xff]  ;;  %v2424_v6 = vpack.c.bf16 %v51_v4, %v50_v2 }
   0x4   :  { %2240 = vmatprep.mubr.msk.f32.mxu0 %vm73_vm0, %v39_v5 }
   0x5   :  { %16 = vsyncpa [#allocation3], 0  ;;  %2421 = vmatprep.subr.bf16.mxu0 %v2420_v3  ;;  %v40_v7 = vld [vmem:[%s3696_s0 + $0x8] sm:$0xff]  ;;  %v179_v8 = vld [vmem:[%s3701_s5] sm:$0xff]  ;;  %vm185_vm1 = vcmask 523264   ;;  %v155_v17 = vlaneseq  ;;  %vm484_vm4 = vcmask 1041408  }
   0x6   :  { %2423 = vmatpush3.bf16.msra.mxu0 %v2420_v3  ;;  %2259 = vmatprep.mubr.msk.f32.mxu1 %vm185_vm1, %v179_v8  ;;  %v52_v9 = vld [vmem:[%s3699_s3 + $0x8] sm:$0xff]  ;;  %v53_v10 = vld [vmem:[%s3699_s3 + $0x18] sm:$0xff]  ;;  %v41_v14 = vld [vmem:[%s3697_s1] sm:$0xff]  ;;  %vm477_vm7 = vcmask 15360   ;;  %s2666_s26 = smov 126   ;;  %vm625_vm8 = vcmask 130048  }
   0x7   :  { %2425 = vmatprep.subr.bf16.mxu0 %v2424_v6  ;;  %v54_v11 = vld [vmem:[%s3699_s3 + $0x28] sm:$0xff]  ;;  %v2444_v12 = vpack.c.bf16 %v53_v10, %v52_v9  ;;  %v55_v13 = vld [vmem:[%s3699_s3 + $0x38] sm:$0xff]  ;;  %v156_v18 = vshrl.u32 %v155_v17, 7  ;;  %v43_v22 = vld [vmem:[%s3698_s2] sm:$0xf] }
   0x8   :  { %v2448_v15 = vpack.c.bf16 %v55_v13, %v54_v11  ;;  %v42_v16 = vld [vmem:[%s3697_s1 + $0x8] sm:$0xff]  ;;  %v57_v43 = vld [vmem:[%s3700_s4] sm:$0xff]  ;;  %v58_v44 = vld [vmem:[%s3700_s4 + $0x10] sm:$0xff] }
   0x9   :  { %v157_v19 = vsub.s32 0, %v156_v18  ;;  %v163_v20 = vsub.s32 1, %v156_v18  ;;  %v169_v21 = vsub.s32 2, %v156_v18  ;;  %v175_v23 = vsub.s32 3, %v156_v18  ;;  %v180_v42 = vld [vmem:[%s3701_s5 + $0x8] sm:$0xff]  ;;  %v59_v46 = vld [vmem:[%s3700_s4 + $0x20] sm:$0xff] }
   0xa   :  { %2427 = vmatpush3.bf16.msra.mxu0 %v2424_v6  ;;  %v2452_v45 = vpack.c.bf16 %v58_v44, %v57_v43  ;;  %v60_v47 = vld [vmem:[%s3700_s4 + $0x30] sm:$0xff]  ;;  %v61_v49 = vld [vmem:[%s3700_s4 + $0x40] sm:$0xff]  ;;  %v56_v17 = vld [vmem:[%s3699_s3 + $0x48] ss:$0 sm:$0xff]  ;;  %s2665_s3 = smov 110  }
   0xb   :  { %2445 = vmatprep.subr.bf16.mxu0 %v2444_v12  ;;  %v158_v24 = vrot.slane %v43_v22, %v157_v19  ;;  %v164_v25 = vrot.slane %v43_v22, %v163_v20  ;;  %v170_v26 = vrot.slane %v43_v22, %v169_v21  ;;  %v176_v27 = vrot.slane %v43_v22, %v175_v23  ;;  %v62_v50 = vld [vmem:[%s3700_s4 + $0x50] sm:$0xff]  ;;  %v63_v52 = vld [vmem:[%s3700_s4 + $0x60] sm:$0xff] }
   0xc   :  { %v2456_v48 = vpack.c.bf16 %v60_v47, %v59_v46  ;;  %v2460_v51 = vpack.c.bf16 %v62_v50, %v61_v49  ;;  %v64_v53 = vld [vmem:[%s3700_s4 + $0x70] sm:$0xff]  ;;  %v2001_v57 = vld [vmem:[%s3698_s2 + $0x4] ss:$0 sm:$0xff]  ;;  %v2858_v50 = vld [vmem:[%s3702_s6 + $0x18] sm:$0xff] }
   0xd   :  { %2241 = vmatmul.mubr.msk.f32.vlgmr.msra.gmra.mrb[0].mxu0 %vm73_vm0, %v40_v7  ;;  %v2464_v54 = vpack.c.bf16 %v64_v53, %v63_v52  ;;  %v583_v43 = vld [vmem:[%s3702_s6] sm:$0xff]  ;;  %v2849_v49 = vld [vmem:[%s3702_s6 + $0x10] sm:$0xff]  ;;  %v2872_v52 = vld [vmem:[%s3702_s6 + $0x28] sm:$0xff] }
   0xe   :  { %2270 = vmatprep.mubr.msk.f32.mxu0 %vm73_vm0, %v41_v14  ;;  %2447 = vmatpush3.bf16.msra.mxu0 %v2444_v12  ;;  %v2877_v53 = vld [vmem:[%s3702_s6 + $0x30] sm:$0xff] }
   0xf   :  { %2449 = vmatprep.subr.bf16.mxu0 %v2448_v15 }
  0x12   :  { %2451 = vmatpush3.bf16.msra.mxu0 %v2448_v15 }
  0x13   :  { %2453 = vmatprep.subr.bf16.mxu0 %v2452_v45 }
  0x15   :  { %2271 = vmatmul.mubr.msk.f32.vlgmr.msra.gmra.mrb[2].mxu0 %vm73_vm0, %v42_v16  ;;  %v47_v16 = vld [vmem:[%s3698_s2 + $0x8] sm:$0x3] }
  0x16   :  { %2455 = vmatpush3.bf16.msra.mxu0 %v2452_v45 }
  0x17   :  { %2457 = vmatprep.subr.bf16.mxu0 %v2456_v48 }
  0x1a   :  { %2459 = vmatpush3.bf16.msra.mxu0 %v2456_v48  ;;  %v2844_v48 = vld [vmem:[%s3702_s6 + $0x8] sm:$0xff] }
  0x1b   :  { %2461 = vmatprep.subr.bf16.mxu0 %v2460_v51 }
  0x1e   :  { %2463 = vmatpush3.bf16.msra.mxu0 %v2460_v51  ;;  %v2863_v51 = vld [vmem:[%s3702_s6 + $0x20] sm:$0xff] }
  0x1f   :  { %2465 = vmatprep.subr.bf16.mxu0 %v2464_v54 }
  0x22   :  { %2467 = vmatpush3.bf16.msra.mxu0 %v2464_v54  ;;  %v2886_v54 = vld [vmem:[%s3702_s6 + $0x38] sm:$0xff] }
  0xe0   :  { %v2779_v28 = vpop.f32.mrb[0].mxu0 }
  0xe1   :  { %v2781_v29 = vpop.f32.mrb[1].mxu0  ;;  %v160_v30 = vmul.f32 %v2779_v28, %v158_v24  ;;  %v166_v31 = vmul.f32 %v2779_v28, %v164_v25  ;;  %v172_v32 = vmul.f32 %v2779_v28, %v170_v26  ;;  %v178_v37 = vmul.f32 %v2779_v28, %v176_v27 }
  0xe2   :  { %v159_v33 = vmul.f32 %v158_v24, %v2781_v29  ;;  %v165_v34 = vmul.f32 %v164_v25, %v2781_v29  ;;  %v171_v35 = vmul.f32 %v170_v26, %v2781_v29  ;;  %v177_v36 = vmul.f32 %v176_v27, %v2781_v29 }
  0xe3   :  { %vm1882_vm9 = vcmp.ge.f32.partialorder %v2781_v29, 0.0  ;;  %vm1883_vm10 = vcmp.ge.f32.partialorder %v2779_v28, 0.0 }
  0xe4   :  { %v2428_v38 = vpack.c.bf16 %v160_v30, %v159_v33  ;;  %v2432_v39 = vpack.c.bf16 %v166_v31, %v165_v34  ;;  %v2436_v40 = vpack.c.bf16 %v172_v32, %v171_v35  ;;  %v2440_v41 = vpack.c.bf16 %v178_v37, %v177_v36 }
  0xe6   :  { %2429 = vmatprep.subr.bf16.mxu1 %v2428_v38 }
  0xe7   :  { %2431 = vmatpush3.bf16.msra.mxu1 %v2428_v38 }
  0xe8   :  { %2433 = vmatprep.subr.bf16.mxu1 %v2432_v39  ;;  %v2272_v55 = vpop.f32.mrb[2].mxu0 }
  0xe9   :  { %v361_v56 = vpop.f32.mrb[3].mxu0  ;;  %v367_v18 = vadd.f32 %v2272_v55, %v56_v17  ;;  %v2891_v55 = vld [vmem:[%s3702_s6 + $0x40] sm:$0xff] }
  0xea   :  { %v362_v19 = vadd.f32 %v361_v56, %v56_v17  ;;  %v2900_v56 = vld [vmem:[%s3702_s6 + $0x48] sm:$0xff]  ;;  %v2008_v17 = vld [vmem:[%s3698_s2 + $0x5] ss:$0 sm:$0xff] }
  0xeb   :  { %2435 = vmatpush3.bf16.msra.mxu1 %v2432_v39  ;;  %v371_v20 = vand.u32 2147483647, %v367_v18  ;;  %vm385_vm5 = vcmp.ge.f32.partialorder %v367_v18, 0.0 }
  0xec   :  { %2437 = vmatprep.subr.bf16.mxu1 %v2436_v40  ;;  %v370_v21 = vand.u32 2147483647, %v362_v19  ;;  %vm384_vm6 = vcmp.ge.f32.partialorder %v362_v19, 0.0 }
  0xed   :  { %v373_v22 = vsub.f32 0.0, %v371_v20 }
  0xee   :  { %v372_v23 = vsub.f32 0.0, %v370_v21 }
  0xef   :  { %2439 = vmatpush3.bf16.msra.mxu1 %v2436_v40  ;;  %v376_v24 = vmul.f32 1.442695, %v373_v22 }
  0xf0   :  { %2441 = vmatprep.subr.bf16.mxu1 %v2440_v41  ;;  %v374_v25 = vmul.f32 1.442695, %v372_v23 }
  0xf3   :  { %2443 = vmatpush3.bf16.msra.mxu1 %v2440_v41 }
  0xf4   :  { %2292 = vmatprep.subr.msk.mxu1 %vm484_vm4, %v47_v16 }
  0xf6   :  { %2260 = vmatmul.mubr.msk.f32.vlgmr.msra.gmra.mrb[0].mxu1 %vm185_vm1, %v180_v42 }
  0xf7   :  { %2293 = vmatpush3.msk.msra.mxu1 %vm484_vm4, %v47_v16  ;;  %v3054_v16 = vld [vmem:[%s3702_s6 + $0xf8] sm:$0xff] }
 0x1c9   :  { %v2261_v58 = vpop.f32.mrb[0].mxu1 }
 0x1ca   :  { %v264_v59 = vadd.f32 %v2261_v58, %v2001_v57  ;;  %v258_v60 = vpop.f32.mrb[1].mxu1  ;;  %v2914_v58 = vld [vmem:[%s3702_s6 + $0x58] sm:$0xff] }
 0x1cb   :  { %v259_v61 = vadd.f32 %v2001_v57, %v258_v60  ;;  %v2905_v57 = vld [vmem:[%s3702_s6 + $0x50] sm:$0xff]  ;;  %v2928_v60 = vld [vmem:[%s3702_s6 + $0x68] sm:$0xff] }
 0x1cc   :  { %v268_v62 = vand.u32 2147483647, %v264_v59  ;;  %vm282_vm2 = vcmp.ge.f32.partialorder %v264_v59, 0.0 }
 0x1cd   :  { %v267_v63 = vand.u32 2147483647, %v259_v61  ;;  %vm281_vm3 = vcmp.ge.f32.partialorder %v259_v61, 0.0 }
 0x1ce   :  { %v270_v0 = vsub.f32 0.0, %v268_v62  ;;  %v2942_v62 = vld [vmem:[%s3702_s6 + $0x78] sm:$0xff] }
 0x1cf   :  { %v269_v1 = vsub.f32 0.0, %v267_v63  ;;  %v2947_v63 = vld [vmem:[%s3702_s6 + $0x80] sm:$0xff] }
 0x1d0   :  { %v273_v2 = vmul.f32 1.442695, %v270_v0  ;;  %v2956_v0 = vld [vmem:[%s3702_s6 + $0x88] sm:$0xff] }
 0x1d1   :  { %v271_v3 = vmul.f32 1.442695, %v269_v1  ;;  %v2961_v1 = vld [vmem:[%s3702_s6 + $0x90] sm:$0xff] }
 0x1d2   :  { %2545 = vpow2.f32 %v273_v2  ;;  %v2970_v2 = vld [vmem:[%s3702_s6 + $0x98] sm:$0xff] }
 0x1d3   :  { %2547 = vpow2.f32 %v271_v3  ;;  %v2975_v3 = vld [vmem:[%s3702_s6 + $0xa0] sm:$0xff] }
 0x1dc   :  { %v2546_v4 = vpop.eup %2545 }
 0x1dd   :  { %v2548_v5 = vpop.eup %2547  ;;  %v276_v6 = vadd.f32 1.0, %v2546_v4  ;;  %v2984_v4 = vld [vmem:[%s3702_s6 + $0xa8] sm:$0xff] }
 0x1de   :  { %v275_v7 = vadd.f32 1.0, %v2548_v5  ;;  %v2989_v5 = vld [vmem:[%s3702_s6 + $0xb0] sm:$0xff] }
 0x1df   :  { %2549 = vrcp.f32 %v276_v6  ;;  %v2998_v6 = vld [vmem:[%s3702_s6 + $0xb8] sm:$0xff] }
 0x1e0   :  { %2551 = vrcp.f32 %v275_v7  ;;  %v3003_v7 = vld [vmem:[%s3702_s6 + $0xc0] sm:$0xff] }
 0x1e1   :  { %2553 = vpow2.f32 %v376_v24 }
 0x1e2   :  { %2555 = vpow2.f32 %v374_v25 }
 0x1e9   :  { %v2550_v8 = vpop.eup %2549 }
 0x1ea   :  { %v2552_v9 = vpop.eup %2551  ;;  %v284_v10 = vsub.f32 1.0, %v2550_v8 }
 0x1eb   :  { %v283_v11 = vsub.f32 1.0, %v2552_v9  ;;  %v2554_v26 = vpop.eup %2553 }
 0x1ec   :  { %v286_v12 = vsel %vm282_vm2, %v2550_v8, %v284_v10  ;;  %v2556_v27 = vpop.eup %2555  ;;  %v379_v30 = vadd.f32 1.0, %v2554_v26  ;;  %v3012_v8 = vld [vmem:[%s3702_s6 + $0xc8] sm:$0xff]  ;;  %v3026_v10 = vld [vmem:[%s3702_s6 + $0xd8] sm:$0xff] }
 0x1ed   :  { %v285_v13 = vsel %vm281_vm3, %v2552_v9, %v283_v11  ;;  %v2824_v15 = vmul.f32 %v286_v12, %v264_v59  ;;  %v378_v31 = vadd.f32 1.0, %v2556_v27  ;;  %v2919_v59 = vld [vmem:[%s3702_s6 + $0x60] sm:$0xff]  ;;  %v3017_v9 = vld [vmem:[%s3702_s6 + $0xd0] sm:$0xff]  ;;  %v3040_v12 = vld [vmem:[%s3702_s6 + $0xe8] sm:$0xff] }
 0x1ee   :  { %v2822_v14 = vmul.f32 %v285_v13, %v259_v61  ;;  %2557 = vrcp.f32 %v379_v30  ;;  %v2933_v61 = vld [vmem:[%s3702_s6 + $0x70] sm:$0xff]  ;;  %v3031_v11 = vld [vmem:[%s3702_s6 + $0xe0] sm:$0xff] }
 0x1ef   :  { %2559 = vrcp.f32 %v378_v31  ;;  %v3045_v13 = vld [vmem:[%s3702_s6 + $0xf0] sm:$0xff]  ;;  %s2667_s6 = smov 64  }
 0x1f0   :  { %2289 = vmatprep.mubr.msk.f32.mxu0 %vm185_vm1, %v2822_v14 }
 0x1f1   :  { %2290 = vmatmul.mubr.msk.f32.vlgmr.msra.gmra.mrb[4].mxu0 %vm185_vm1, %v2824_v15 }
 0x1f2   :  { %2353 = vmatprep.mubr.msk.f32.mxu0 %vm625_vm8, %v583_v43 }
 0x1f8   :  { %v2558_v32 = vpop.eup %2557 }
 0x1f9   :  { %v2560_v33 = vpop.eup %2559  ;;  %v387_v34 = vsub.f32 1.0, %v2558_v32 }
 0x1fa   :  { %v386_v35 = vsub.f32 1.0, %v2560_v33 }
 0x1fb   :  { %v389_v36 = vsel %vm385_vm5, %v2558_v32, %v387_v34 }
 0x1fc   :  { %v388_v39 = vsel %vm384_vm6, %v2560_v33, %v386_v35 }
 0x2c4   :  { %v2291_v37 = vpop.f32.mrb[4].mxu0 }
 0x2c5   :  { %v472_v38 = vmul.f32 %v2291_v37, %v389_v36  ;;  %v462_v40 = vpop.f32.mrb[5].mxu0 }
 0x2c6   :  { %v471_v41 = vmul.f32 %v462_v40, %v388_v39 }
 0x2c8   :  { %1694 = vrot.lane.b32.xlu1 %v471_v41, %s2665_s3  ;;  %2294 = vmatprep.mubr.msk.f32.mxu1 %vm477_vm7, %v471_v41  ;;  %v2535_v42 = vpack.i.bf16 %v472_v38, %v471_v41 }
 0x2c9   :  { %2295 = vmatmul.mubr.msk.f32.vlgmr.msra.gmra.mrb[2].mxu1 %vm477_vm7, %v472_v38 }
 0x2ca   :  { %2536 = vrot.lane.b32.xlu0 %v2535_v42, %s2666_s26  ;;  %2301 = vmatprep.mubr.msk.f32.mxu1 %vm625_vm8, %v583_v43 }
 0x2cc   :  { %1696 = vrot.lane.b32.xlu1 %v472_v38, %s2665_s3 }
 0x33c   :  { %v2537_v44 = vpop.permute.xlu0 %2536 }
 0x33d   :  { %v2539_v45 = vunpack.i.h.bf16 %v2537_v44  ;;  %v2538_v46 = vunpack.i.l.bf16 %v2537_v44 }
 0x33f   :  { %v2472_v47 = vpack.c.bf16 %v2539_v45, %v2538_v46  ;;  %v1307_v45 = vld [vmem:[%s3703_s7 + $0x8] sm:$0xff]  ;;  %v1306_v46 = vld [vmem:[%s3703_s7] sm:$0xff] }
 0x341   :  { %2473 = vmatprep.subr.bf16.mxu0 %v2472_v47 }
 0x342   :  { %2475 = vmatpush3.bf16.msra.mxu0 %v2472_v47 }
 0x345   :  { %2354 = vmatmul.mubr.msk.f32.vlgmr.msra.gmra.mrb[6].mxu0 %vm625_vm8, %v2844_v48 }
 0x346   :  { %2356 = vmatprep.mubr.msk.f32.mxu0 %vm625_vm8, %v2849_v49 }
 0x349   :  { %2357 = vmatmul.mubr.msk.f32.gmra.mrb[8].mxu0 %vm625_vm8, %v2858_v50 }
 0x34a   :  { %2359 = vmatprep.mubr.msk.f32.mxu0 %vm625_vm8, %v2863_v51 }
 0x34d   :  { %2360 = vmatmul.mubr.msk.f32.gmra.mrb[10].mxu0 %vm625_vm8, %v2872_v52 }
 0x34e   :  { %2362 = vmatprep.mubr.msk.f32.mxu0 %vm625_vm8, %v2877_v53 }
 0x351   :  { %2363 = vmatmul.mubr.msk.f32.gmra.mrb[12].mxu0 %vm625_vm8, %v2886_v54 }
 0x352   :  { %2365 = vmatprep.mubr.msk.f32.mxu0 %vm625_vm8, %v2891_v55 }
 0x355   :  { %2366 = vmatmul.mubr.msk.f32.gmra.mrb[14].mxu0 %vm625_vm8, %v2900_v56 }
 0x356   :  { %2368 = vmatprep.mubr.msk.f32.mxu0 %vm625_vm8, %v2905_v57 }
 0x359   :  { %2369 = vmatmul.mubr.msk.f32.gmra.mrb[16].mxu0 %vm625_vm8, %v2914_v58 }
 0x35a   :  { %2371 = vmatprep.mubr.msk.f32.mxu0 %vm625_vm8, %v2919_v59 }
 0x35d   :  { %2372 = vmatmul.mubr.msk.f32.gmra.mrb[18].mxu0 %vm625_vm8, %v2928_v60 }
 0x35e   :  { %2374 = vmatprep.mubr.msk.f32.mxu0 %vm625_vm8, %v2933_v61 }
 0x361   :  { %2375 = vmatmul.mubr.msk.f32.gmra.mrb[20].mxu0 %vm625_vm8, %v2942_v62 }
 0x362   :  { %2377 = vmatprep.mubr.msk.f32.mxu0 %vm625_vm8, %v2947_v63 }
 0x365   :  { %2378 = vmatmul.mubr.msk.f32.gmra.mrb[22].mxu0 %vm625_vm8, %v2956_v0 }
 0x366   :  { %2380 = vmatprep.mubr.msk.f32.mxu0 %vm625_vm8, %v2961_v1 }
 0x369   :  { %2381 = vmatmul.mubr.msk.f32.gmra.mrb[24].mxu0 %vm625_vm8, %v2970_v2 }
 0x36a   :  { %2383 = vmatprep.mubr.msk.f32.mxu0 %vm625_vm8, %v2975_v3 }
 0x36d   :  { %2384 = vmatmul.mubr.msk.f32.gmra.mrb[26].mxu0 %vm625_vm8, %v2984_v4 }
 0x36e   :  { %2386 = vmatprep.mubr.msk.f32.mxu0 %vm625_vm8, %v2989_v5 }
 0x371   :  { %2387 = vmatmul.mubr.msk.f32.gmra.mrb[28].mxu0 %vm625_vm8, %v2998_v6 }
 0x372   :  { %2389 = vmatprep.mubr.msk.f32.mxu0 %vm625_vm8, %v3003_v7 }
 0x375   :  { %2390 = vmatmul.mubr.msk.f32.gmra.mrb[30].mxu0 %vm625_vm8, %v3012_v8 }
 0x376   :  { %2392 = vmatprep.mubr.msk.f32.mxu0 %vm625_vm8, %v3017_v9 }
 0x379   :  { %2393 = vmatmul.mubr.msk.f32.gmra.mrb[32].mxu0 %vm625_vm8, %v3026_v10 }
 0x37a   :  { %2395 = vmatprep.mubr.msk.f32.mxu0 %vm625_vm8, %v3031_v11 }
 0x37d   :  { %2396 = vmatmul.mubr.msk.f32.gmra.mrb[34].mxu0 %vm625_vm8, %v3040_v12 }
 0x37e   :  { %2398 = vmatprep.mubr.msk.f32.mxu0 %vm625_vm8, %v3045_v13 }
 0x381   :  { %2399 = vmatmul.mubr.msk.f32.gmra.mrb[36].mxu0 %vm625_vm8, %v3054_v16 }
 0x39c   :  { %v2296_v18 = vpop.f32.mrb[2].mxu1 }
 0x39d   :  { %v560_v19 = vadd.f32 %v2296_v18, %v2008_v17  ;;  %v554_v20 = vpop.f32.mrb[3].mxu1 }
 0x39e   :  { %v555_v21 = vadd.f32 %v2008_v17, %v554_v20  ;;  %v1309_v20 = vld [vmem:[%s3703_s7 + $0x18] sm:$0xff] }
 0x39f   :  { %v566_v22 = vand.u32 2147483647, %v560_v19  ;;  %v564_v36 = vmax.f32 %v560_v19, 0.0 }
 0x3a0   :  { %v565_v23 = vand.u32 2147483647, %v555_v21  ;;  %v563_v38 = vmax.f32 %v555_v21, 0.0 }
 0x3a1   :  { %v568_v24 = vsub.f32 0.0, %v566_v22  ;;  %v1308_v22 = vld [vmem:[%s3703_s7 + $0x10] sm:$0xff] }
 0x3a2   :  { %v567_v25 = vsub.f32 0.0, %v565_v23 }
 0x3a3   :  { %v571_v26 = vmul.f32 1.442695, %v568_v24 }
 0x3a4   :  { %v569_v27 = vmul.f32 1.442695, %v567_v25 }
 0x3a5   :  { %2561 = vpow2.f32 %v571_v26 }
 0x3a6   :  { %2563 = vpow2.f32 %v569_v27 }
 0x3af   :  { %v2562_v30 = vpop.eup %2561 }
 0x3b0   :  { %v2564_v31 = vpop.eup %2563  ;;  %v574_v32 = vadd.f32 1.0, %v2562_v30 }
 0x3b1   :  { %v573_v33 = vadd.f32 1.0, %v2564_v31  ;;  %v1311_v31 = vld [vmem:[%s3703_s7 + $0x28] sm:$0xff] }
 0x3b2   :  { %2565 = vlog2.f32 %v574_v32  ;;  %v1310_v32 = vld [vmem:[%s3703_s7 + $0x20] sm:$0xff] }
 0x3b3   :  { %2567 = vlog2.f32 %v573_v33 }
 0x3bc   :  { %v2566_v34 = vpop.eup %2565 }
 0x3bd   :  { %v2568_v35 = vpop.eup %2567  ;;  %v578_v37 = vmul.f32 0.6931472, %v2566_v34 }
 0x3be   :  { %v576_v39 = vmul.f32 0.6931472, %v2568_v35 }
 0x3bf   :  { %v3061_v40 = vadd.f32 %v578_v37, %v564_v36 }
 0x3c0   :  { %v3063_v41 = vadd.f32 %v576_v39, %v563_v38  ;;  %v1313_v38 = vld [vmem:[%s3703_s7 + $0x38] sm:$0xff]  ;;  %v1312_v39 = vld [vmem:[%s3703_s7 + $0x30] sm:$0xff] }
 0x3c1   :  { %v582_v42 = vmul.f32 %v3061_v40, %v2824_v15 }
 0x3c2   :  { %v581_v43 = vmul.f32 %v3063_v41, %v2822_v14 }
 0x3c4   :  { %v2540_v44 = vpack.i.bf16 %v582_v42, %v581_v43 }
 0x3c6   :  { %2541 = vrot.lane.b32.xlu0 %v2540_v44, %s2667_s6 }
 0x418   :  { %v2355_v47 = vpop.f32.mrb[6].mxu0 }
 0x419   :  { %v1339_v17 = vmul.f32 %v2355_v47, %v1307_v45  ;;  %v1147_v18 = vpop.f32.mrb[7].mxu0 }
 0x41a   :  { %v1338_v19 = vmul.f32 %v1306_v46, %v1147_v18  ;;  %v1314_v18 = vld [vmem:[%s3703_s7 + $0x40] sm:$0xff] }
 0x41b   :  { %v1373_v21 = vsel %vm625_vm8, %v1339_v17, 0.0  ;;  %v1315_v17 = vld [vmem:[%s3703_s7 + $0x48] sm:$0xff] }
 0x41c   :  { %v2358_v23 = vpop.f32.mrb[8].mxu0  ;;  %v1370_v24 = vsel %vm625_vm8, %v1338_v19, 0.0  ;;  %1374 = vadd.xlane.f32.xlu1 %v1373_v21 }
 0x41d   :  { %v1341_v25 = vmul.f32 %v2358_v23, %v1309_v20  ;;  %1371 = vadd.xlane.f32.xlu0 %v1370_v24  ;;  %v1157_v26 = vpop.f32.mrb[9].mxu0 }
 0x41e   :  { %v1340_v27 = vmul.f32 %v1308_v22, %v1157_v26  ;;  %v1316_v26 = vld [vmem:[%s3703_s7 + $0x50] sm:$0xff] }
 0x41f   :  { %v1379_v30 = vsel %vm625_vm8, %v1341_v25, 0.0  ;;  %v1317_v25 = vld [vmem:[%s3703_s7 + $0x58] sm:$0xff] }
 0x420   :  { %v2361_v33 = vpop.f32.mrb[10].mxu0  ;;  %v1376_v37 = vsel %vm625_vm8, %v1340_v27, 0.0 }
 0x421   :  { %1380 = vadd.xlane.f32.xlu0 %v1379_v30  ;;  %v1167_v34 = vpop.f32.mrb[11].mxu0  ;;  %v1343_v35 = vmul.f32 %v2361_v33, %v1311_v31 }
 0x422   :  { %v1342_v36 = vmul.f32 %v1310_v32, %v1167_v34 }
 0x423   :  { %v1385_v47 = vsel %vm625_vm8, %v1343_v35, 0.0  ;;  %v1319_v35 = vld [vmem:[%s3703_s7 + $0x68] sm:$0xff] }
 0x424   :  { %v2364_v42 = vpop.f32.mrb[12].mxu0  ;;  %v1382_v43 = vsel %vm625_vm8, %v1342_v36, 0.0  ;;  %v1318_v36 = vld [vmem:[%s3703_s7 + $0x60] sm:$0xff] }
 0x425   :  { %1377 = vadd.xlane.f32.xlu0 %v1376_v37  ;;  %1383 = vadd.xlane.f32.xlu1 %v1382_v43  ;;  %v1177_v44 = vpop.f32.mrb[13].mxu0  ;;  %v1345_v45 = vmul.f32 %v2364_v42, %v1313_v38 }
 0x426   :  { %v1344_v46 = vmul.f32 %v1312_v39, %v1177_v44 }
 0x427   :  { %v1391_v24 = vsel %vm625_vm8, %v1345_v45, 0.0  ;;  %v1321_v45 = vld [vmem:[%s3703_s7 + $0x78] sm:$0xff] }
 0x428   :  { %v2367_v19 = vpop.f32.mrb[14].mxu0  ;;  %v1388_v20 = vsel %vm625_vm8, %v1344_v46, 0.0  ;;  %v1320_v46 = vld [vmem:[%s3703_s7 + $0x70] sm:$0xff] }
 0x429   :  { %1386 = vadd.xlane.f32.xlu0 %v1385_v47  ;;  %1389 = vadd.xlane.f32.xlu1 %v1388_v20  ;;  %v1187_v21 = vpop.f32.mrb[15].mxu0  ;;  %v1347_v22 = vmul.f32 %v2367_v19, %v1315_v17 }
 0x42a   :  { %v1346_v23 = vmul.f32 %v1314_v18, %v1187_v21 }
 0x42b   :  { %v1397_v34 = vsel %vm625_vm8, %v1347_v22, 0.0  ;;  %v1323_v22 = vld [vmem:[%s3703_s7 + $0x88] sm:$0xff] }
 0x42c   :  { %v2370_v27 = vpop.f32.mrb[16].mxu0  ;;  %v1394_v30 = vsel %vm625_vm8, %v1346_v23, 0.0  ;;  %v1322_v23 = vld [vmem:[%s3703_s7 + $0x80] sm:$0xff] }
 0x42d   :  { %1392 = vadd.xlane.f32.xlu0 %v1391_v24  ;;  %1395 = vadd.xlane.f32.xlu1 %v1394_v30  ;;  %v1197_v31 = vpop.f32.mrb[17].mxu0  ;;  %v1349_v32 = vmul.f32 %v2370_v27, %v1317_v25 }
 0x42e   :  { %v1348_v33 = vmul.f32 %v1316_v26, %v1197_v31  ;;  %v1691_v31 = vld [vmem:[%s3705_s9 + $0x8] sm:$0xff] }
 0x42f   :  { %v1403_v44 = vsel %vm625_vm8, %v1349_v32, 0.0  ;;  %v1693_v32 = vld [vmem:[%s3705_s9 + $0x18] sm:$0xff] }
 0x430   :  { %v2373_v37 = vpop.f32.mrb[18].mxu0  ;;  %v1400_v38 = vsel %vm625_vm8, %v1348_v33, 0.0 }
 0x431   :  { %1398 = vadd.xlane.f32.xlu0 %v1397_v34  ;;  %1401 = vadd.xlane.f32.xlu1 %v1400_v38  ;;  %v1207_v39 = vpop.f32.mrb[19].mxu0  ;;  %v1351_v42 = vmul.f32 %v2373_v37, %v1319_v35 }
 0x432   :  { %v1350_v43 = vmul.f32 %v1318_v36, %v1207_v39  ;;  %v1325_v39 = vld [vmem:[%s3703_s7 + $0x98] sm:$0xff] }
 0x433   :  { %v1409_v21 = vsel %vm625_vm8, %v1351_v42, 0.0  ;;  %v1324_v42 = vld [vmem:[%s3703_s7 + $0x90] sm:$0xff] }
 0x434   :  { %v2376_v47 = vpop.f32.mrb[20].mxu0  ;;  %v1406_v17 = vsel %vm625_vm8, %v1350_v43, 0.0 }
 0x435   :  { %1404 = vadd.xlane.f32.xlu0 %v1403_v44  ;;  %1407 = vadd.xlane.f32.xlu1 %v1406_v17  ;;  %v1217_v18 = vpop.f32.mrb[21].mxu0  ;;  %v1353_v19 = vmul.f32 %v2376_v47, %v1321_v45  ;;  %v2476_v44 = vpack.c.bf16 %v1693_v32, %v1691_v31  ;;  %v1690_v45 = vld [vmem:[%s3705_s9] sm:$0xff]  ;;  %v1329_v31 = vld [vmem:[%s3703_s7 + $0xb8] sm:$0xff]  ;;  %v1328_v32 = vld [vmem:[%s3703_s7 + $0xb0] sm:$0xff] }
 0x436   :  { %v1352_v20 = vmul.f32 %v1320_v46, %v1217_v18 }
 0x437   :  { %v1415_v36 = vsel %vm625_vm8, %v1353_v19, 0.0 }
 0x438   :  { %v2542_v24 = vpop.permute.xlu0 %2541  ;;  %v2379_v25 = vpop.f32.mrb[22].mxu0  ;;  %v1412_v26 = vsel %vm625_vm8, %v1352_v20, 0.0 }
 0x439   :  { %v2544_v27 = vunpack.i.h.bf16 %v2542_v24  ;;  %v2543_v30 = vunpack.i.l.bf16 %v2542_v24  ;;  %1410 = vadd.xlane.f32.xlu0 %v1409_v21  ;;  %1413 = vadd.xlane.f32.xlu1 %v1412_v26  ;;  %v1227_v33 = vpop.f32.mrb[23].mxu0  ;;  %v1355_v34 = vmul.f32 %v2379_v25, %v1323_v22  ;;  %v1327_v21 = vld [vmem:[%s3703_s7 + $0xa8] sm:$0xff]  ;;  %v1326_v22 = vld [vmem:[%s3703_s7 + $0xa0] sm:$0xff] }
 0x43a   :  { %v1354_v35 = vmul.f32 %v1322_v23, %v1227_v33 }
 0x43b   :  { %v623_v37 = vsel %vm185_vm1, %v3063_v41, %v2543_v30  ;;  %v624_v38 = vsel %vm185_vm1, %v3061_v40, %v2544_v27  ;;  %v1692_v41 = vld [vmem:[%s3705_s9 + $0x10] sm:$0xff]  ;;  %v1421_v19 = vsel %vm625_vm8, %v1355_v34, 0.0 }
 0x43c   :  { %v2468_v43 = vpack.c.bf16 %v624_v38, %v623_v37  ;;  %v2382_v46 = vpop.f32.mrb[24].mxu0  ;;  %v1418_v40 = vsel %vm625_vm8, %v1354_v35, 0.0  ;;  %v2478_v20 = vpack.c.bf16 %v1692_v41, %v1690_v45  ;;  %v1331_v37 = vld [vmem:[%s3703_s7 + $0xc8] sm:$0xff]  ;;  %v1330_v38 = vld [vmem:[%s3703_s7 + $0xc0] sm:$0xff]  ;;  %v1333_v45 = vld [vmem:[%s3703_s7 + $0xd8] sm:$0xff] }
 0x43d   :  { %1416 = vadd.xlane.f32.xlu0 %v1415_v36  ;;  %1419 = vadd.xlane.f32.xlu1 %v1418_v40  ;;  %v1237_v47 = vpop.f32.mrb[25].mxu0  ;;  %v1357_v17 = vmul.f32 %v2382_v46, %v1325_v39  ;;  %v1332_v41 = vld [vmem:[%s3703_s7 + $0xd0] sm:$0xff] }
 0x43e   :  { %2469 = vmatprep.subr.bf16.mxu1 %v2468_v43  ;;  %v1356_v18 = vmul.f32 %v1324_v42, %v1237_v47 }
 0x43f   :  { %2471 = vmatpush3.bf16.msra.mxu1 %v2468_v43  ;;  %v1427_v30 = vsel %vm625_vm8, %v1357_v17, 0.0 }
 0x440   :  { %2477 = vmatprep.subr.bf16.mxu1 %v2476_v44  ;;  %v2385_v23 = vpop.f32.mrb[26].mxu0  ;;  %v1424_v24 = vsel %vm625_vm8, %v1356_v18, 0.0  ;;  %v1335_v18 = vld [vmem:[%s3703_s7 + $0xe8] sm:$0xff] }
 0x441   :  { %1422 = vadd.xlane.f32.xlu0 %v1421_v19  ;;  %1425 = vadd.xlane.f32.xlu1 %v1424_v24  ;;  %v1247_v25 = vpop.f32.mrb[27].mxu0  ;;  %v1359_v26 = vmul.f32 %v2385_v23, %v1327_v21  ;;  %v1334_v19 = vld [vmem:[%s3703_s7 + $0xe0] sm:$0xff]  ;;  %v1337_v24 = vld [vmem:[%s3703_s7 + $0xf8] sm:$0xff] }
 0x442   :  { %2302 = vmatmul.mubr.msk.f32.vlgmr.msra.gmra.mrb[4].mxu1 %vm625_vm8, %v2844_v48  ;;  %v1358_v27 = vmul.f32 %v1326_v22, %v1247_v25  ;;  %v1336_v25 = vld [vmem:[%s3703_s7 + $0xf0] sm:$0xff] }
 0x443   :  { %2304 = vmatprep.mubr.msk.f32.mxu1 %vm625_vm8, %v2849_v49  ;;  %2479 = vmatpush1.bf16.msra.mxu1 %v2478_v20  ;;  %v1433_v36 = vsel %vm625_vm8, %v1359_v26, 0.0 }
 0x444   :  { %v2388_v33 = vpop.f32.mrb[28].mxu0  ;;  %v1430_v34 = vsel %vm625_vm8, %v1358_v27, 0.0 }
 0x445   :  { %1431 = vadd.xlane.f32.xlu1 %v1430_v34  ;;  %v1257_v48 = vpop.f32.mrb[29].mxu0  ;;  %1428 = vadd.xlane.f32.xlu0 %v1427_v30  ;;  %v1361_v35 = vmul.f32 %v2388_v33, %v1329_v31 }
 0x446   :  { %2305 = vmatmul.mubr.msk.f32.gmra.mrb[6].mxu1 %vm625_vm8, %v2858_v50  ;;  %v1360_v49 = vmul.f32 %v1328_v32, %v1257_v48 }
 0x447   :  { %2307 = vmatprep.mubr.msk.f32.mxu1 %vm625_vm8, %v2863_v51  ;;  %v1439_v51 = vsel %vm625_vm8, %v1361_v35, 0.0 }
 0x448   :  { %v2391_v39 = vpop.f32.mrb[30].mxu0  ;;  %v1436_v42 = vsel %vm625_vm8, %v1360_v49, 0.0 }
 0x449   :  { %1437 = vadd.xlane.f32.xlu1 %v1436_v42  ;;  %v1267_v50 = vpop.f32.mrb[31].mxu0  ;;  %1434 = vadd.xlane.f32.xlu0 %v1433_v36  ;;  %v1363_v43 = vmul.f32 %v2391_v39, %v1331_v37 }
 0x44a   :  { %2308 = vmatmul.mubr.msk.f32.gmra.mrb[8].mxu1 %vm625_vm8, %v2872_v52  ;;  %v1362_v44 = vmul.f32 %v1330_v38, %v1267_v50 }
 0x44b   :  { %2310 = vmatprep.mubr.msk.f32.mxu1 %vm625_vm8, %v2877_v53  ;;  %v1445_v53 = vsel %vm625_vm8, %v1363_v43, 0.0 }
 0x44c   :  { %v2394_v46 = vpop.f32.mrb[32].mxu0  ;;  %v1442_v40 = vsel %vm625_vm8, %v1362_v44, 0.0 }
 0x44d   :  { %1443 = vadd.xlane.f32.xlu1 %v1442_v40  ;;  %v1277_v52 = vpop.f32.mrb[33].mxu0  ;;  %1440 = vadd.xlane.f32.xlu0 %v1439_v51  ;;  %v1365_v47 = vmul.f32 %v2394_v46, %v1333_v45 }
 0x44e   :  { %2311 = vmatmul.mubr.msk.f32.gmra.mrb[10].mxu1 %vm625_vm8, %v2886_v54  ;;  %v1364_v17 = vmul.f32 %v1332_v41, %v1277_v52  ;;  %v1868_v52 = vand.u32 2147483647, %v2781_v29 }
 0x44f   :  { %2313 = vmatprep.mubr.msk.f32.mxu1 %vm625_vm8, %v2891_v55  ;;  %v1451_v55 = vsel %vm625_vm8, %v1365_v47, 0.0 }
 0x450   :  { %v2397_v20 = vpop.f32.mrb[34].mxu0  ;;  %v1448_v21 = vsel %vm625_vm8, %v1364_v17, 0.0 }
 0x451   :  { %1449 = vadd.xlane.f32.xlu1 %v1448_v21  ;;  %v1287_v54 = vpop.f32.mrb[35].mxu0  ;;  %1446 = vadd.xlane.f32.xlu0 %v1445_v53  ;;  %v1367_v22 = vmul.f32 %v2397_v20, %v1335_v18  ;;  %v1870_v21 = vsub.f32 0.0, %v1868_v52 }
 0x452   :  { %2314 = vmatmul.mubr.msk.f32.gmra.mrb[12].mxu1 %vm625_vm8, %v2900_v56  ;;  %v1366_v23 = vmul.f32 %v1334_v19, %v1287_v54  ;;  %v1869_v19 = vand.u32 2147483647, %v2779_v28 }
 0x453   :  { %2316 = vmatprep.mubr.msk.f32.mxu1 %vm625_vm8, %v2905_v57  ;;  %v1457_v57 = vsel %vm625_vm8, %v1367_v22, 0.0 }
 0x454   :  { %v2400_v26 = vpop.f32.mrb[36].mxu0  ;;  %v1454_v27 = vsel %vm625_vm8, %v1366_v23, 0.0 }
 0x455   :  { %1455 = vadd.xlane.f32.xlu1 %v1454_v27  ;;  %v1297_v56 = vpop.f32.mrb[37].mxu0  ;;  %1452 = vadd.xlane.f32.xlu0 %v1451_v55  ;;  %v1369_v30 = vmul.f32 %v2400_v26, %v1337_v24  ;;  %v1871_v24 = vsub.f32 0.0, %v1869_v19  ;;  %v1872_v27 = vmul.f32 1.442695, %v1870_v21 }
 0x456   :  { %2317 = vmatmul.mubr.msk.f32.gmra.mrb[14].mxu1 %vm625_vm8, %v2914_v58  ;;  %v1368_v31 = vmul.f32 %v1336_v25, %v1297_v56  ;;  %v1695_v58 = vpop.permute.xlu1 %1694 }
 0x457   :  { %2319 = vmatprep.mubr.msk.f32.mxu1 %vm625_vm8, %v2919_v59  ;;  %v1463_v33 = vsel %vm625_vm8, %v1369_v30, 0.0  ;;  %v2668_v59 = vmov 0.0   ;;  %2569 = vpow2.f32 %v1872_v27 }
 0x458   :  { %v1460_v32 = vsel %vm625_vm8, %v1368_v31, 0.0 }
 0x459   :  { %1461 = vadd.xlane.f32.xlu1 %v1460_v32  ;;  %1458 = vadd.xlane.f32.xlu0 %v1457_v57  ;;  %v1874_v57 = vmul.f32 1.442695, %v1871_v24 }
 0x45a   :  { %2320 = vmatmul.mubr.msk.f32.gmra.mrb[16].mxu1 %vm625_vm8, %v2928_v60  ;;  %v1697_v60 = vpop.permute.xlu1 %1696 }
 0x45b   :  { %2322 = vmatprep.mubr.msk.f32.mxu1 %vm625_vm8, %v2933_v61  ;;  %2571 = vpow2.f32 %v1874_v57 }
 0x45d   :  { %1464 = vadd.xlane.f32.xlu0 %v1463_v33 }
 0x45e   :  { %2323 = vmatmul.mubr.msk.f32.gmra.mrb[18].mxu1 %vm625_vm8, %v2942_v62 }
 0x45f   :  { %2325 = vmatprep.mubr.msk.f32.mxu1 %vm625_vm8, %v2947_v63 }
 0x462   :  { %2326 = vmatmul.mubr.msk.f32.gmra.mrb[20].mxu1 %vm625_vm8, %v2956_v0 }
 0x463   :  { %2328 = vmatprep.mubr.msk.f32.mxu1 %vm625_vm8, %v2961_v1 }
 0x466   :  { %2329 = vmatmul.mubr.msk.f32.gmra.mrb[22].mxu1 %vm625_vm8, %v2970_v2 }
 0x467   :  { %2331 = vmatprep.mubr.msk.f32.mxu1 %vm625_vm8, %v2975_v3 }
 0x46a   :  { %2332 = vmatmul.mubr.msk.f32.gmra.mrb[24].mxu1 %vm625_vm8, %v2984_v4 }
 0x46b   :  { %2334 = vmatprep.mubr.msk.f32.mxu1 %vm625_vm8, %v2989_v5 }
 0x46e   :  { %2335 = vmatmul.mubr.msk.f32.gmra.mrb[26].mxu1 %vm625_vm8, %v2998_v6 }
 0x46f   :  { %2337 = vmatprep.mubr.msk.f32.mxu1 %vm625_vm8, %v3003_v7 }
 0x472   :  { %2338 = vmatmul.mubr.msk.f32.gmra.mrb[28].mxu1 %vm625_vm8, %v3012_v8 }
 0x473   :  { %2340 = vmatprep.mubr.msk.f32.mxu1 %vm625_vm8, %v3017_v9 }
 0x476   :  { %2341 = vmatmul.mubr.msk.f32.gmra.mrb[30].mxu1 %vm625_vm8, %v3026_v10 }
 0x477   :  { %2343 = vmatprep.mubr.msk.f32.mxu1 %vm625_vm8, %v3031_v11 }
 0x47a   :  { %2344 = vmatmul.mubr.msk.f32.gmra.mrb[32].mxu1 %vm625_vm8, %v3040_v12 }
 0x47b   :  { %2346 = vmatprep.mubr.msk.f32.mxu1 %vm625_vm8, %v3045_v13 }
 0x47e   :  { %2347 = vmatmul.mubr.msk.f32.gmra.mrb[34].mxu1 %vm625_vm8, %v3054_v16 }
 0x47f   :  { %1766 = vmatprep.mubr.f32.mxu1 %v2668_v59 }
 0x482   :  { %2076 = vmatmul.mubr.msk.f32.vlgmr.msra.gmra.mrb[36].mxu1 %vm625_vm8, %v1695_v58 }
 0x483   :  { %1772 = vmatprep.mubr.f32.mxu1 %v2668_v59 }
 0x486   :  { %2077 = vmatmul.mubr.msk.f32.gmra.mrb[38].mxu1 %vm625_vm8, %v1697_v60 }
 0x4a9   :  { %v1375_v63 = vpop.xlane.xlu1 %1374 }
 0x4aa   :  { %v1372_v61 = vpop.xlane.xlu0 %1371 }
 0x4ae   :  { %v1381_v62 = vpop.xlane.xlu0 %1380 }
 0x4b2   :  { %v1378_v0 = vpop.xlane.xlu0 %1377  ;;  %v1384_v1 = vpop.xlane.xlu1 %1383 }
 0x4b6   :  { %v1387_v2 = vpop.xlane.xlu0 %1386  ;;  %v1390_v3 = vpop.xlane.xlu1 %1389 }
 0x4ba   :  { %v1393_v4 = vpop.xlane.xlu0 %1392  ;;  %v1396_v5 = vpop.xlane.xlu1 %1395 }
 0x4be   :  { %v1399_v6 = vpop.xlane.xlu0 %1398  ;;  %v1402_v7 = vpop.xlane.xlu1 %1401 }
 0x4c2   :  { %v1405_v11 = vpop.xlane.xlu0 %1404  ;;  %v1408_v48 = vpop.xlane.xlu1 %1407 }
 0x4c6   :  { %v1411_v35 = vpop.xlane.xlu0 %1410  ;;  %v1414_v39 = vpop.xlane.xlu1 %1413 }
 0x4ca   :  { %v1417_v44 = vpop.xlane.xlu0 %1416  ;;  %v1420_v40 = vpop.xlane.xlu1 %1419 }
 0x4ce   :  { %v1423_v17 = vpop.xlane.xlu0 %1422  ;;  %v1426_v22 = vpop.xlane.xlu1 %1425 }
 0x4d2   :  { %v1429_v26 = vpop.xlane.xlu0 %1428  ;;  %v1432_v33 = vpop.xlane.xlu1 %1431 }
 0x4d6   :  { %v1435_v59 = vpop.xlane.xlu0 %1434 }
 0x515   :  { %v3278_v8 = vpop.f32.mrb[4].mxu1 }
 0x516   :  { %v1467_v9 = vmul.f32 %v3278_v8, %v1375_v63  ;;  %v3281_v10 = vpop.f32.mrb[5].mxu1 }
 0x517   :  { %v1466_v12 = vmul.f32 %v1372_v61, %v3281_v10 }
 0x518   :  { %1508 = vrot.lane.b32.xlu0 %v1467_v9, %s2667_s6 }
 0x519   :  { %1506 = vrot.lane.b32.xlu1 %v1466_v12, %s2667_s6  ;;  %v3286_v13 = vpop.f32.mrb[6].mxu1 }
 0x51a   :  { %v1469_v16 = vmul.f32 %v3286_v13, %v1381_v62  ;;  %v3289_v34 = vpop.f32.mrb[7].mxu1 }
 0x51b   :  { %v1468_v37 = vmul.f32 %v1378_v0, %v3289_v34  ;;  %v1438_v0 = vpop.xlane.xlu1 %1437 }
 0x51d   :  { %1512 = vrot.lane.b32.xlu1 %v1469_v16, %s2667_s6  ;;  %v3292_v49 = vpop.f32.mrb[8].mxu1 }
 0x51e   :  { %v3294_v36 = vpop.f32.mrb[9].mxu1  ;;  %v1471_v42 = vmul.f32 %v3292_v49, %v1387_v2 }
 0x51f   :  { %v1470_v38 = vmul.f32 %v1384_v1, %v3294_v36  ;;  %v1444_v12 = vpop.xlane.xlu1 %1443 }
 0x521   :  { %1510 = vrot.lane.b32.xlu1 %v1468_v37, %s2667_s6  ;;  %1530 = vrot.lane.b32.xlu0 %v1470_v38, %s2667_s6  ;;  %v3301_v50 = vpop.f32.mrb[10].mxu1 }
 0x522   :  { %v3303_v43 = vpop.f32.mrb[11].mxu1  ;;  %v1473_v45 = vmul.f32 %v3301_v50, %v1393_v4  ;;  %v1441_v4 = vpop.xlane.xlu0 %1440 }
 0x523   :  { %v1472_v51 = vmul.f32 %v1390_v3, %v3303_v43 }
 0x525   :  { %1532 = vrot.lane.b32.xlu1 %v1471_v42, %s2667_s6  ;;  %1534 = vrot.lane.b32.xlu0 %v1472_v51, %s2667_s6  ;;  %v3309_v41 = vpop.f32.mrb[12].mxu1 }
 0x526   :  { %v3311_v46 = vpop.f32.mrb[13].mxu1  ;;  %v1475_v53 = vmul.f32 %v3309_v41, %v1399_v6  ;;  %v2570_v6 = vpop.eup %2569 }
 0x527   :  { %v1474_v47 = vmul.f32 %v1396_v5, %v3311_v46  ;;  %v1447_v37 = vpop.xlane.xlu0 %1446 }
 0x529   :  { %1536 = vrot.lane.b32.xlu1 %v1473_v45, %s2667_s6  ;;  %1554 = vrot.lane.b32.xlu0 %v1474_v47, %s2667_s6  ;;  %v3318_v18 = vpop.f32.mrb[14].mxu1  ;;  %v1450_v45 = vpop.xlane.xlu1 %1449 }
 0x52a   :  { %v3321_v20 = vpop.f32.mrb[15].mxu1  ;;  %v1477_v23 = vmul.f32 %v3318_v18, %v1405_v11 }
 0x52b   :  { %v1476_v54 = vmul.f32 %v1402_v7, %v3321_v20 }
 0x52d   :  { %1556 = vrot.lane.b32.xlu1 %v1475_v53, %s2667_s6  ;;  %1558 = vrot.lane.b32.xlu0 %v1476_v54, %s2667_s6  ;;  %v3327_v55 = vpop.f32.mrb[16].mxu1 }
 0x52e   :  { %v3329_v25 = vpop.f32.mrb[17].mxu1  ;;  %v1479_v30 = vmul.f32 %v3327_v55, %v1411_v35  ;;  %v1876_v35 = vadd.f32 1.0, %v2570_v6 }
 0x52f   :  { %v1478_v56 = vmul.f32 %v1408_v48, %v3329_v25  ;;  %v2572_v48 = vpop.eup %2571 }
 0x530   :  { %2573 = vrcp.f32 %v1876_v35 }
 0x531   :  { %1560 = vrot.lane.b32.xlu1 %v1477_v23, %s2667_s6  ;;  %1578 = vrot.lane.b32.xlu0 %v1478_v56, %s2667_s6  ;;  %v3335_v31 = vpop.f32.mrb[18].mxu1 }
 0x532   :  { %v3337_v32 = vpop.f32.mrb[19].mxu1  ;;  %v1481_v60 = vmul.f32 %v3335_v31, %v1417_v44  ;;  %v1877_v44 = vadd.f32 1.0, %v2572_v48 }
 0x533   :  { %v1480_v58 = vmul.f32 %v1414_v39, %v3337_v32 }
 0x534   :  { %2575 = vrcp.f32 %v1877_v44  ;;  %v65_v44 = vld [vmem:[%s3700_s4 + $0x8] sm:$0xff] }
 0x535   :  { %1580 = vrot.lane.b32.xlu1 %v1479_v30, %s2667_s6  ;;  %1582 = vrot.lane.b32.xlu0 %v1480_v58, %s2667_s6  ;;  %v3343_v61 = vpop.f32.mrb[20].mxu1 }
 0x536   :  { %v3345_v62 = vpop.f32.mrb[21].mxu1  ;;  %v1483_v1 = vmul.f32 %v3343_v61, %v1423_v17  ;;  %v1453_v17 = vpop.xlane.xlu0 %1452 }
 0x537   :  { %v1482_v63 = vmul.f32 %v1420_v40, %v3345_v62 }
 0x539   :  { %1584 = vrot.lane.b32.xlu1 %v1481_v60, %s2667_s6  ;;  %1602 = vrot.lane.b32.xlu0 %v1482_v63, %s2667_s6  ;;  %v3351_v2 = vpop.f32.mrb[22].mxu1 }
 0x53a   :  { %v3353_v3 = vpop.f32.mrb[23].mxu1  ;;  %v1485_v9 = vmul.f32 %v3351_v2, %v1429_v26  ;;  %v1459_v24 = vpop.xlane.xlu0 %1458 }
 0x53b   :  { %v1484_v5 = vmul.f32 %v1426_v22, %v3353_v3  ;;  %v1456_v22 = vpop.xlane.xlu1 %1455  ;;  %v2574_v56 = vpop.eup %2573 }
 0x53c   :  { %v1884_v63 = vsub.f32 1.0, %v2574_v56 }
 0x53d   :  { %1604 = vrot.lane.b32.xlu1 %v1483_v1, %s2667_s6  ;;  %1606 = vrot.lane.b32.xlu0 %v1484_v5, %s2667_s6  ;;  %v3358_v7 = vpop.f32.mrb[24].mxu1  ;;  %v1780_v5 = vld [vmem:[%s3706_s10 + $0x8] sm:$0xff] }
 0x53e   :  { %v3361_v11 = vpop.f32.mrb[25].mxu1  ;;  %v1487_v39 = vmul.f32 %v3358_v7, %v1435_v59  ;;  %v2576_v58 = vpop.eup %2575 }
 0x53f   :  { %v1486_v16 = vmul.f32 %v1432_v33, %v3361_v11  ;;  %v1462_v33 = vpop.xlane.xlu1 %1461  ;;  %v1465_v1 = vpop.xlane.xlu0 %1464  ;;  %v1885_v6 = vsub.f32 1.0, %v2576_v58 }
 0x541   :  { %1608 = vrot.lane.b32.xlu1 %v1485_v9, %s2667_s6  ;;  %1626 = vrot.lane.b32.xlu0 %v1486_v16, %s2667_s6  ;;  %v3366_v38 = vpop.f32.mrb[26].mxu1  ;;  %v1886_v16 = vsel %vm1882_vm9, %v2574_v56, %v1884_v63  ;;  %v954_v63 = vld [vmem:[%s3704_s8 + $0x38] sm:$0xff] }
 0x542   :  { %v3369_v42 = vpop.f32.mrb[27].mxu1  ;;  %v1489_v52 = vmul.f32 %v3366_v38, %v1441_v4 }
 0x543   :  { %v1488_v51 = vmul.f32 %v1438_v0, %v3369_v42 }
 0x545   :  { %1628 = vrot.lane.b32.xlu1 %v1487_v39, %s2667_s6  ;;  %1630 = vrot.lane.b32.xlu0 %v1488_v51, %s2667_s6  ;;  %v3374_v40 = vpop.f32.mrb[28].mxu1  ;;  %v1887_v39 = vsel %vm1883_vm10, %v2576_v58, %v1885_v6  ;;  %v66_v51 = vld [vmem:[%s3700_s4 + $0x18] sm:$0xff]  ;;  %v953_v6 = vld [vmem:[%s3704_s8 + $0x30] sm:$0xff] }
 0x546   :  { %v3377_v47 = vpop.f32.mrb[29].mxu1  ;;  %v1491_v21 = vmul.f32 %v3374_v40, %v1447_v37  ;;  %v1888_v37 = vmul.f32 %v1886_v16, %v2781_v29  ;;  %v1889_v29 = vmul.f32 %v2779_v28, %v1887_v39  ;;  %v950_v28 = vld [vmem:[%s3704_s8 + $0x18] sm:$0xff] }
 0x547   :  { %v1490_v53 = vmul.f32 %v1444_v12, %v3377_v47  ;;  %v982_v56 = vmul.f32 %v3286_v13, %v950_v28 }
 0x549   :  { %1632 = vrot.lane.b32.xlu1 %v1489_v52, %s2667_s6  ;;  %1650 = vrot.lane.b32.xlu0 %v1490_v53, %s2667_s6  ;;  %v3382_v19 = vpop.f32.mrb[30].mxu1  ;;  %v2512_v52 = vpack.c.bf16 %v66_v51, %v65_v44  ;;  %v948_v53 = vld [vmem:[%s3704_s8 + $0x8] sm:$0xff]  ;;  %v958_v51 = vld [vmem:[%s3704_s8 + $0x58] sm:$0xff] }
 0x54a   :  { %v3385_v54 = vpop.f32.mrb[31].mxu1  ;;  %v1493_v27 = vmul.f32 %v3382_v19, %v1453_v17 }
 0x54b   :  { %v1492_v23 = vmul.f32 %v1450_v45, %v3385_v54  ;;  %2513 = vmatprep.subr.bf16.mxu1 %v2512_v52 }
 0x54c   :  { %2515 = vmatpush3.bf16.msra.mxu1 %v2512_v52 }
 0x54d   :  { %1652 = vrot.lane.b32.xlu1 %v1491_v21, %s2667_s6  ;;  %1654 = vrot.lane.b32.xlu0 %v1492_v23, %s2667_s6  ;;  %v3390_v26 = vpop.f32.mrb[32].mxu1  ;;  %v947_v21 = vld [vmem:[%s3704_s8] sm:$0xff] }
 0x54e   :  { %v3393_v30 = vpop.f32.mrb[33].mxu1  ;;  %v1495_v60 = vmul.f32 %v3390_v26, %v1459_v24  ;;  %v979_v23 = vmul.f32 %v947_v21, %v3281_v10  ;;  %v952_v24 = vld [vmem:[%s3704_s8 + $0x28] sm:$0xff] }
 0x54f   :  { %v1494_v57 = vmul.f32 %v1456_v22, %v3393_v30  ;;  %v980_v22 = vmul.f32 %v3278_v8, %v948_v53  ;;  %v949_v8 = vld [vmem:[%s3704_s8 + $0x10] sm:$0xff]  ;;  %v984_v10 = vmul.f32 %v3292_v49, %v952_v24  ;;  %v955_v49 = vld [vmem:[%s3704_s8 + $0x40] sm:$0xff] }
 0x550   :  { %v981_v13 = vmul.f32 %v949_v8, %v3289_v34  ;;  %v956_v34 = vld [vmem:[%s3704_s8 + $0x48] sm:$0xff] }
 0x551   :  { %1656 = vrot.lane.b32.xlu1 %v1493_v27, %s2667_s6  ;;  %1674 = vrot.lane.b32.xlu0 %v1494_v57, %s2667_s6  ;;  %v3398_v59 = vpop.f32.mrb[34].mxu1  ;;  %v1013_v27 = vmul.f32 1.442695, %v980_v22  ;;  %v951_v57 = vld [vmem:[%s3704_s8 + $0x20] sm:$0xff]  ;;  %v988_v39 = vmul.f32 %v3309_v41, %v956_v34  ;;  %v990_v22 = vmul.f32 %v3318_v18, %v958_v51  ;;  %v960_v41 = vld [vmem:[%s3704_s8 + $0x68] sm:$0xff] }
 0x552   :  { %v3401_v0 = vpop.f32.mrb[35].mxu1  ;;  %v1497_v12 = vmul.f32 %v3398_v59, %v1465_v1  ;;  %v983_v58 = vmul.f32 %v951_v57, %v3294_v36  ;;  %v1021_v1 = vmul.f32 1.442695, %v984_v10  ;;  %v1015_v36 = vmul.f32 1.442695, %v981_v13  ;;  %v965_v51 = vld [vmem:[%s3704_s8 + $0x90] sm:$0xff] }
 0x553   :  { %v1496_v4 = vmul.f32 %v1462_v33, %v3401_v0  ;;  %v1011_v33 = vmul.f32 1.442695, %v979_v23  ;;  %2577 = vpow2.f32 %v1013_v27  ;;  %v1029_v21 = vmul.f32 1.442695, %v988_v39 }
 0x554   :  { %v992_v10 = vmul.f32 %v3327_v55, %v960_v41 }
 0x555   :  { %1676 = vrot.lane.b32.xlu1 %v1495_v60, %s2667_s6  ;;  %v3409_v9 = vpop.f32.mrb[36].mxu1  ;;  %1678 = vrot.lane.b32.xlu0 %v1496_v4, %s2667_s6  ;;  %v1017_v60 = vmul.f32 1.442695, %v982_v56  ;;  %2579 = vpow2.f32 %v1011_v33  ;;  %v1019_v4 = vmul.f32 1.442695, %v983_v58  ;;  %v961_v33 = vld [vmem:[%s3704_s8 + $0x70] sm:$0xff] }
 0x556   :  { %v1770_v48 = vpop.f32.mrb[37].mxu1 }
 0x557   :  { %v1784_v35 = vmul.f32 %v1780_v5, %v1770_v48  ;;  %v986_v5 = vmul.f32 %v3301_v50, %v954_v63  ;;  %2581 = vpow2.f32 %v1017_v60  ;;  %v987_v50 = vmul.f32 %v955_v49, %v3311_v46  ;;  %v957_v48 = vld [vmem:[%s3704_s8 + $0x50] sm:$0xff]  ;;  %v959_v46 = vld [vmem:[%s3704_s8 + $0x60] sm:$0xff] }
 0x558   :  { %2583 = vpow2.f32 %v1021_v1  ;;  %v989_v52 = vmul.f32 %v957_v48, %v3321_v20  ;;  %v991_v20 = vmul.f32 %v959_v46, %v3329_v25  ;;  %v1033_v63 = vmul.f32 1.442695, %v990_v22  ;;  %v962_v25 = vld [vmem:[%s3704_s8 + $0x78] sm:$0xff]  ;;  %v963_v49 = vld [vmem:[%s3704_s8 + $0x80] sm:$0xff] }
 0x559   :  { %1680 = vrot.lane.b32.xlu1 %v1497_v12, %s2667_s6  ;;  %v3422_v45 = vpop.f32.mrb[38].mxu1  ;;  %1857 = vmatprep.mubr.f32.mxu0 %v1784_v35  ;;  %v985_v12 = vmul.f32 %v953_v6, %v3303_v43  ;;  %2585 = vpow2.f32 %v1019_v4  ;;  %v1025_v16 = vmul.f32 1.442695, %v986_v5  ;;  %v1027_v43 = vmul.f32 1.442695, %v987_v50 }
 0x55a   :  { %1892 = vrot.lane.b32.xlu0 %v1888_v37, %s2667_s6  ;;  %v3425_v17 = vpop.f32.mrb[39].mxu1  ;;  %2587 = vpow2.f32 %v1015_v36  ;;  %v1031_v24 = vmul.f32 1.442695, %v989_v52  ;;  %v1035_v5 = vmul.f32 1.442695, %v991_v20  ;;  %v993_v6 = vmul.f32 %v961_v33, %v3337_v32  ;;  %v964_v32 = vld [vmem:[%s3704_s8 + $0x88] sm:$0xff] }
 0x55b   :  { %v1023_v37 = vmul.f32 1.442695, %v985_v12  ;;  %2589 = vpow2.f32 %v1025_v16  ;;  %v1037_v16 = vmul.f32 1.442695, %v992_v10  ;;  %v994_v34 = vmul.f32 %v3335_v31, %v962_v25 }
 0x55d   :  { %1894 = vrot.lane.b32.xlu1 %v1889_v29, %s2667_s6  ;;  %v2578_v35 = vpop.eup %2577  ;;  %2591 = vpow2.f32 %v1023_v37  ;;  %v995_v37 = vmul.f32 %v963_v49, %v3345_v62  ;;  %v966_v62 = vld [vmem:[%s3704_s8 + $0x98] sm:$0xff] }
 0x55e   :  { %v1499_v29 = vmul.f32 0.0, %v2578_v35  ;;  %2593 = vpow2.f32 %v1027_v43  ;;  %v1039_v35 = vmul.f32 1.442695, %v993_v6  ;;  %v998_v10 = vmul.f32 %v3351_v2, %v966_v62  ;;  %v969_v2 = vld [vmem:[%s3704_s8 + $0xb0] sm:$0xff] }
 0x55f   :  { %v2580_v44 = vpop.eup %2579  ;;  %2595 = vpow2.f32 %v1029_v21 }
 0x560   :  { %v1498_v28 = vmul.f32 0.0, %v2580_v44  ;;  %2597 = vpow2.f32 %v1031_v24 }
 0x561   :  { %v2582_v53 = vpop.eup %2581  ;;  %2599 = vpow2.f32 %v1033_v63 }
 0x562   :  { %v2584_v57 = vpop.eup %2583  ;;  %v1501_v58 = vmul.f32 0.0, %v2582_v53  ;;  %2601 = vpow2.f32 %v1035_v5  ;;  %v996_v53 = vmul.f32 %v3343_v61, %v964_v32  ;;  %v967_v61 = vld [vmem:[%s3704_s8 + $0xa0] sm:$0xff] }
 0x563   :  { %v2586_v18 = vpop.eup %2585  ;;  %2603 = vpow2.f32 %v1037_v16 }
 0x564   :  { %v2588_v4 = vpop.eup %2587  ;;  %2605 = vpow2.f32 %v1039_v35 }
 0x565   :  { %v2590_v12 = vpop.eup %2589  ;;  %v1500_v50 = vmul.f32 0.0, %v2588_v4  ;;  %v999_v4 = vmul.f32 %v967_v61, %v3361_v11 }
 0x567   :  { %v2592_v43 = vpop.eup %2591 }
 0x568   :  { %v2594_v46 = vpop.eup %2593 }
 0x58a   :  { %v1509_v23 = vpop.permute.xlu0 %1508 }
 0x58b   :  { %v3484_v27 = vadd.f32 %v1509_v23, %v1499_v29  ;;  %v1507_v56 = vpop.permute.xlu1 %1506  ;;  %v1041_v29 = vmul.f32 1.442695, %v994_v34  ;;  %v1043_v23 = vmul.f32 1.442695, %v995_v37  ;;  %v1049_v34 = vmul.f32 1.442695, %v998_v10 }
 0x58c   :  { %v3489_v8 = vadd.f32 %v1507_v56, %v1498_v28  ;;  %v997_v28 = vmul.f32 %v965_v51, %v3353_v3  ;;  %v2596_v56 = vpop.eup %2595  ;;  %v968_v3 = vld [vmem:[%s3704_s8 + $0xa8] sm:$0xff] }
 0x58d   :  { %v1523_v60 = vmul.f32 %v2584_v57, %v3484_v27  ;;  %2607 = vpow2.f32 %v1041_v29 }
 0x58e   :  { %v2482_v13 = vpack.c.bf16 %v3484_v27, %v3489_v8  ;;  %v1522_v1 = vmul.f32 %v2586_v18, %v3489_v8  ;;  %v2598_v18 = vpop.eup %2597  ;;  %2609 = vpow2.f32 %v1043_v23 }
 0x58f   :  { %v1513_v55 = vpop.permute.xlu1 %1512 }
 0x590   :  { %v3503_v36 = vadd.f32 %v1513_v55, %v1501_v58  ;;  %v1045_v58 = vmul.f32 1.442695, %v996_v53  ;;  %v2600_v55 = vpop.eup %2599 }
 0x591   :  { %v2602_v16 = vpop.eup %2601 }
 0x592   :  { %v1525_v48 = vmul.f32 %v2590_v12, %v3503_v36  ;;  %2611 = vpow2.f32 %v1045_v58  ;;  %v2604_v37 = vpop.eup %2603 }
 0x593   :  { %v1511_v39 = vpop.permute.xlu1 %1510  ;;  %v1531_v44 = vpop.permute.xlu0 %1530 }
 0x594   :  { %v3514_v31 = vadd.f32 %v1511_v39, %v1500_v50  ;;  %v3516_v52 = vadd.f32 %v1531_v44, %v1522_v1  ;;  %v1000_v50 = vmul.f32 %v3358_v7, %v968_v3  ;;  %v1051_v39 = vmul.f32 1.442695, %v999_v4  ;;  %v971_v7 = vld [vmem:[%s3704_s8 + $0xc0] sm:$0xff]  ;;  %v2606_v53 = vpop.eup %2605 }
 0x595   :  { %v1001_v44 = vmul.f32 %v969_v2, %v3369_v42 }
 0x596   :  { %v2486_v21 = vpack.c.bf16 %v3503_v36, %v3514_v31  ;;  %v1524_v22 = vmul.f32 %v2592_v43, %v3514_v31  ;;  %v1546_v41 = vmul.f32 %v2594_v46, %v3516_v52  ;;  %v1053_v62 = vmul.f32 1.442695, %v1000_v50 }
 0x597   :  { %v1533_v24 = vpop.permute.xlu1 %1532  ;;  %v1535_v20 = vpop.permute.xlu0 %1534 }
 0x598   :  { %v3530_v57 = vadd.f32 %v1533_v24, %v1523_v60  ;;  %v3532_v33 = vadd.f32 %v1535_v20, %v1524_v22  ;;  %v1047_v60 = vmul.f32 1.442695, %v997_v28  ;;  %v2608_v24 = vpop.eup %2607  ;;  %v1055_v20 = vmul.f32 1.442695, %v1001_v44 }
 0x599   :  { %v2610_v3 = vpop.eup %2609 }
 0x59a   :  { %v2490_v63 = vpack.c.bf16 %v3530_v57, %v3516_v52  ;;  %v1547_v25 = vmul.f32 %v2596_v56, %v3530_v57  ;;  %v1548_v1 = vmul.f32 %v2598_v18, %v3532_v33  ;;  %2613 = vpow2.f32 %v1047_v60  ;;  %v974_v60 = vld [vmem:[%s3704_s8 + $0xd8] sm:$0xff] }
 0x59b   :  { %v1537_v5 = vpop.permute.xlu1 %1536  ;;  %v1555_v6 = vpop.permute.xlu0 %1554  ;;  %2615 = vpow2.f32 %v1049_v34  ;;  %v1003_v56 = vmul.f32 %v971_v7, %v3377_v47  ;;  %v976_v7 = vld [vmem:[%s3704_s8 + $0xe8] sm:$0xff] }
 0x59c   :  { %v3546_v49 = vadd.f32 %v1537_v5, %v1525_v48  ;;  %v3548_v12 = vadd.f32 %v1555_v6, %v1546_v41  ;;  %v970_v48 = vld [vmem:[%s3704_s8 + $0xb8] sm:$0xff]  ;;  %v972_v41 = vld [vmem:[%s3704_s8 + $0xc8] sm:$0xff]  ;;  %2617 = vpow2.f32 %v1051_v39  ;;  %v2612_v34 = vpop.eup %2611  ;;  %v1006_v39 = vmul.f32 %v3382_v19, %v974_v60  ;;  %v977_v19 = vld [vmem:[%s3704_s8 + $0xf0] sm:$0xff] }
 0x59d   :  { %v1002_v22 = vmul.f32 %v3366_v38, %v970_v48  ;;  %v973_v38 = vld [vmem:[%s3704_s8 + $0xd0] sm:$0xff]  ;;  %2619 = vpow2.f32 %v1053_v62  ;;  %v1059_v6 = vmul.f32 1.442695, %v1003_v56  ;;  %v978_v60 = vld [vmem:[%s3704_s8 + $0xf8] sm:$0xff] }
 0x59e   :  { %v2494_v35 = vpack.c.bf16 %v3546_v49, %v3532_v33  ;;  %v1549_v11 = vmul.f32 %v2600_v55, %v3546_v49  ;;  %v1570_v32 = vmul.f32 %v2602_v16, %v3548_v12  ;;  %2621 = vpow2.f32 %v1055_v20 }
 0x59f   :  { %v1557_v43 = vpop.permute.xlu1 %1556  ;;  %v1559_v51 = vpop.permute.xlu0 %1558  ;;  %v1005_v55 = vmul.f32 %v973_v38, %v3385_v54  ;;  %v1008_v20 = vmul.f32 %v3390_v26, %v976_v7 }
 0x5a0   :  { %v3562_v46 = vadd.f32 %v1557_v43, %v1547_v25  ;;  %v3564_v29 = vadd.f32 %v1559_v51, %v1548_v1  ;;  %v1004_v25 = vmul.f32 %v3374_v40, %v972_v41  ;;  %v1057_v1 = vmul.f32 1.442695, %v1002_v22  ;;  %v975_v40 = vld [vmem:[%s3704_s8 + $0xe0] sm:$0xff] }
 0x5a1   :  { %v1063_v51 = vmul.f32 1.442695, %v1005_v55 }
 0x5a2   :  { %v2498_v42 = vpack.c.bf16 %v3562_v46, %v3548_v12  ;;  %v1571_v23 = vmul.f32 %v2604_v37, %v3562_v46  ;;  %v1572_v28 = vmul.f32 %v2606_v53, %v3564_v29  ;;  %v1061_v37 = vmul.f32 1.442695, %v1004_v25  ;;  %v1779_v46 = vld [vmem:[%s3706_s10] sm:$0xff] }
 0x5a3   :  { %v1561_v61 = vpop.permute.xlu1 %1560  ;;  %v1579_v18 = vpop.permute.xlu0 %1578  ;;  %2623 = vpow2.f32 %v1057_v1  ;;  %v1007_v53 = vmul.f32 %v975_v40, %v3393_v30 }
 0x5a4   :  { %v3578_v10 = vadd.f32 %v1561_v61, %v1549_v11  ;;  %v3580_v58 = vadd.f32 %v1579_v18, %v1570_v32  ;;  %v2614_v32 = vpop.eup %2613  ;;  %2625 = vpow2.f32 %v1059_v6  ;;  %v1069_v6 = vmul.f32 1.442695, %v1008_v20 }
 0x5a5   :  { %v2616_v43 = vpop.eup %2615  ;;  %2627 = vpow2.f32 %v1061_v37  ;;  %v1067_v38 = vmul.f32 1.442695, %v1007_v53 }
 0x5a6   :  { %v2502_v47 = vpack.c.bf16 %v3578_v10, %v3564_v29  ;;  %v1573_v4 = vmul.f32 %v2608_v24, %v3578_v10  ;;  %v1594_v5 = vmul.f32 %v2610_v3, %v3580_v58  ;;  %v1065_v24 = vmul.f32 1.442695, %v1006_v39  ;;  %v1781_v10 = vld [vmem:[%s3706_s10 + $0x10] sm:$0xff] }
 0x5a7   :  { %v1581_v2 = vpop.permute.xlu1 %1580  ;;  %v1583_v16 = vpop.permute.xlu0 %1582  ;;  %2629 = vpow2.f32 %v1063_v51  ;;  %v1009_v3 = vmul.f32 %v977_v19, %v3401_v0  ;;  %v1783_v29 = vmul.f32 %v1779_v46, %v3409_v9 }
 0x5a8   :  { %v3594_v50 = vadd.f32 %v1581_v2, %v1571_v23  ;;  %v3596_v11 = vadd.f32 %v1583_v16, %v1572_v28  ;;  %v2618_v28 = vpop.eup %2617  ;;  %2631 = vpow2.f32 %v1065_v24 }
 0x5a9   :  { %v2620_v18 = vpop.eup %2619  ;;  %2633 = vpow2.f32 %v1067_v38  ;;  %v1071_v40 = vmul.f32 1.442695, %v1009_v3 }
 0x5aa   :  { %v2506_v48 = vpack.c.bf16 %v3594_v50, %v3580_v58  ;;  %v1595_v54 = vmul.f32 %v2612_v34, %v3594_v50  ;;  %v1596_v44 = vmul.f32 %v2614_v32, %v3596_v11  ;;  %v2622_v26 = vpop.eup %2621  ;;  %v1010_v34 = vmul.f32 %v3398_v59, %v978_v60  ;;  %v67_v50 = vld [vmem:[%s3700_s4 + $0x28] sm:$0xff] }
 0x5ab   :  { %v1585_v62 = vpop.permute.xlu1 %1584  ;;  %v1603_v22 = vpop.permute.xlu0 %1602  ;;  %2635 = vpow2.f32 %v1069_v6 }
 0x5ac   :  { %v3610_v41 = vadd.f32 %v1585_v62, %v1573_v4  ;;  %v1614_v23 = vadd.f32 %v1603_v22, %v1594_v5  ;;  %v1073_v62 = vmul.f32 1.442695, %v1010_v34  ;;  %2637 = vpow2.f32 %v1071_v40 }
 0x5ad   :  { %v2624_v37 = vpop.eup %2623 }
 0x5ae   :  { %v2510_v56 = vpack.c.bf16 %v3610_v41, %v3596_v11  ;;  %v1597_v61 = vmul.f32 %v2616_v43, %v3610_v41  ;;  %v1618_v30 = vmul.f32 %v2618_v28, %v1614_v23  ;;  %v2626_v51 = vpop.eup %2625  ;;  %2639 = vpow2.f32 %v1073_v62  ;;  %v68_v11 = vld [vmem:[%s3700_s4 + $0x38] sm:$0xff]  ;;  %v71_v41 = vld [vmem:[%s3700_s4 + $0x68] sm:$0xff] }
 0x5af   :  { %v1605_v25 = vpop.permute.xlu1 %1604  ;;  %v1607_v1 = vpop.permute.xlu0 %1606  ;;  %v2516_v9 = vpack.c.bf16 %v68_v11, %v67_v50 }
 0x5b0   :  { %v1615_v4 = vadd.f32 %v1605_v25, %v1595_v54  ;;  %v1616_v5 = vadd.f32 %v1607_v1, %v1596_v44  ;;  %v2628_v53 = vpop.eup %2627 }
 0x5b1   :  { %v2630_v28 = vpop.eup %2629  ;;  %2517 = vmatprep.subr.bf16.mxu1 %v2516_v9 }
 0x5b2   :  { %v2480_v55 = vpack.c.bf16 %v1615_v4, %v1614_v23  ;;  %v1619_v2 = vmul.f32 %v2620_v18, %v1615_v4  ;;  %v1620_v16 = vmul.f32 %v2622_v26, %v1616_v5  ;;  %2519 = vmatpush3.bf16.msra.mxu1 %v2516_v9 }
 0x5b3   :  { %v1609_v32 = vpop.permute.xlu1 %1608  ;;  %v1627_v0 = vpop.permute.xlu0 %1626 }
 0x5b4   :  { %v1617_v39 = vadd.f32 %v1609_v32, %v1597_v61  ;;  %v1638_v43 = vadd.f32 %v1627_v0, %v1618_v30  ;;  %2481 = vmatprep.subr.bf16.mxu0 %v2480_v55 }
 0x5b5   :  { %2483 = vmatpush3.bf16.msra.mxu0 %v2482_v13  ;;  %v2632_v13 = vpop.eup %2631 }
 0x5b6   :  { %v2484_v54 = vpack.c.bf16 %v1617_v39, %v1616_v5  ;;  %v1621_v44 = vmul.f32 %v2624_v37, %v1617_v39  ;;  %v1642_v7 = vmul.f32 %v2626_v51, %v1638_v43  ;;  %v2634_v38 = vpop.eup %2633  ;;  %v2078_v51 = vld [vmem:[%s3698_s2 + $0x6] ss:$0 sm:$0xff]  ;;  %s2669_s2 = smov [#allocation2]  }
 0x5b7   :  { %v1629_v59 = vpop.permute.xlu1 %1628  ;;  %v1631_v22 = vpop.permute.xlu0 %1630 }
 0x5b8   :  { %v1639_v19 = vadd.f32 %v1629_v59, %v1619_v2  ;;  %v1640_v23 = vadd.f32 %v1631_v22, %v1620_v16  ;;  %2485 = vmatprep.subr.bf16.mxu0 %v2484_v54 }
 0x5b9   :  { %2487 = vmatpush3.bf16.msra.mxu0 %v2486_v21  ;;  %v2636_v21 = vpop.eup %2635 }
 0x5ba   :  { %v2488_v24 = vpack.c.bf16 %v1639_v19, %v1638_v43  ;;  %v1643_v27 = vmul.f32 %v2628_v53, %v1639_v19  ;;  %v1644_v8 = vmul.f32 %v2630_v28, %v1640_v23  ;;  %v2638_v5 = vpop.eup %2637  ;;  %v1792_v28 = vmul.f32 %v2078_v51, %v2824_v15 }
 0x5bb   :  { %v1633_v20 = vpop.permute.xlu1 %1632  ;;  %v1651_v61 = vpop.permute.xlu0 %1650 }
 0x5bc   :  { %v1641_v30 = vadd.f32 %v1633_v20, %v1621_v44  ;;  %v1662_v18 = vadd.f32 %v1651_v61, %v1642_v7  ;;  %2489 = vmatprep.subr.bf16.mxu0 %v2488_v24  ;;  %v1791_v7 = vmul.f32 %v2078_v51, %v2822_v14 }
 0x5bd   :  { %2491 = vmatpush3.bf16.msra.mxu0 %v2490_v63  ;;  %v2640_v63 = vpop.eup %2639 }
 0x5be   :  { %v2492_v3 = vpack.c.bf16 %v1641_v30, %v1640_v23  ;;  %v1645_v25 = vmul.f32 %v2632_v13, %v1641_v30  ;;  %v1666_v1 = vmul.f32 %v2634_v38, %v1662_v18 }
 0x5bf   :  { %v1653_v36 = vpop.permute.xlu1 %1652  ;;  %v1655_v31 = vpop.permute.xlu0 %1654 }
 0x5c0   :  { %v1663_v60 = vadd.f32 %v1653_v36, %v1643_v27  ;;  %v1664_v4 = vadd.f32 %v1655_v31, %v1644_v8  ;;  %2493 = vmatprep.subr.bf16.mxu0 %v2492_v3 }
 0x5c1   :  { %2495 = vmatpush3.bf16.msra.mxu0 %v2494_v35 }
 0x5c2   :  { %v2496_v26 = vpack.c.bf16 %v1663_v60, %v1662_v18  ;;  %v1667_v6 = vmul.f32 %v2636_v21, %v1663_v60  ;;  %v1668_v55 = vmul.f32 %v2638_v5, %v1664_v4 }
 0x5c3   :  { %v1657_v2 = vpop.permute.xlu1 %1656  ;;  %v1675_v52 = vpop.permute.xlu0 %1674 }
 0x5c4   :  { %v1665_v57 = vadd.f32 %v1657_v2, %v1645_v25  ;;  %2497 = vmatprep.subr.bf16.mxu0 %v2496_v26  ;;  %v1686_v32 = vadd.f32 %v1675_v52, %v1666_v1 }
 0x5c5   :  { %2499 = vmatpush3.bf16.msra.mxu0 %v2498_v42  ;;  %v1782_v42 = vld [vmem:[%s3706_s10 + $0x18] sm:$0xff] }
 0x5c6   :  { %v2500_v16 = vpack.c.bf16 %v1665_v57, %v1664_v4  ;;  %v1669_v34 = vmul.f32 %v2640_v63, %v1665_v57  ;;  %v1786_v58 = vmul.f32 %v1782_v42, %v3425_v17  ;;  %v69_v17 = vld [vmem:[%s3700_s4 + $0x48] sm:$0xff] }
 0x5c7   :  { %v1677_v40 = vpop.permute.xlu1 %1676  ;;  %v1679_v33 = vpop.permute.xlu0 %1678 }
 0x5c8   :  { %v1687_v0 = vadd.f32 %v1677_v40, %v1667_v6  ;;  %2501 = vmatprep.subr.bf16.mxu0 %v2500_v16  ;;  %v1688_v37 = vadd.f32 %v1679_v33, %v1668_v55 }
 0x5c9   :  { %2503 = vmatpush3.bf16.msra.mxu0 %v2502_v47  ;;  %v1785_v47 = vmul.f32 %v1781_v10, %v3422_v45  ;;  %v70_v45 = vld [vmem:[%s3700_s4 + $0x58] sm:$0xff] }
 0x5ca   :  { %v2504_v49 = vpack.c.bf16 %v1687_v0, %v1686_v32 }
 0x5cb   :  { %v1681_v35 = vpop.permute.xlu1 %1680 }
 0x5cc   :  { %v1689_v39 = vadd.f32 %v1681_v35, %v1669_v34  ;;  %2505 = vmatprep.subr.bf16.mxu0 %v2504_v49  ;;  %v1893_v22 = vpop.permute.xlu0 %1892 }
 0x5cd   :  { %2507 = vmatpush3.bf16.msra.mxu0 %v2506_v48  ;;  %v2520_v48 = vpack.c.bf16 %v70_v45, %v69_v17 }
 0x5ce   :  { %v2508_v12 = vpack.c.bf16 %v1689_v39, %v1688_v37 }
 0x5cf   :  { %2521 = vmatprep.subr.bf16.mxu1 %v2520_v48  ;;  %v1895_v8 = vpop.permute.xlu1 %1894 }
 0x5d0   :  { %2509 = vmatprep.subr.bf16.mxu0 %v2508_v12  ;;  %2523 = vmatpush3.bf16.msra.mxu1 %v2520_v48 }
 0x5d1   :  { %2511 = vmatpush3.bf16.msra.mxu0 %v2510_v56  ;;  %v72_v56 = vld [vmem:[%s3700_s4 + $0x78] sm:$0xff]  ;;  %s1988_s4 = sshll.u32 %s2669_s2, 4  ;;  %s1989_s4 = int_to_ptr.vmem [resolvable:$true] %s1988_s4 }
 0x5d2   :  { %v2524_v43 = vpack.c.bf16 %v72_v56, %v71_v41  ;;  %s2641_s5 = scalar_lea.vmem %s1989_s4, 256  ;;  %p2646_p1 = scmp.lt.s32.totalorder %s1989_s4, %s1989_s4 }
 0x5d3   :  { %p2642_p0 = scmp.ne.s32.totalorder %s1989_s4, %s2641_s5  ;;  %p2647_p2 = scmp.lt.s32.totalorder %s2641_s5, %s2641_s5 }
 0x5d4   :  { %1858 = vmatmul.mubr.f32.vlgmr.msra.gmra.mrb[38].mxu0 %v1783_v29  ;;  %2525 = vmatprep.subr.bf16.mxu1 %v2524_v43 }
 0x5d5   :  { %1862 = vmatprep.mubr.f32.mxu0 %v1786_v58  ;;  %2527 = vmatpush3.bf16.msra.mxu1 %v2524_v43  ;;  %p2648_p3 = por %p2647_p2, %p2646_p1 }
 0x5d7   :  { %p2649_p4 = pnand %p2648_p3, %p2642_p0 }
 0x5d8   :  { %1863 = vmatmul.mubr.f32.gmra.mrb[40].mxu0 %v1785_v47 }
 0x6a7   :  { %v2216_v54 = vpop.f32.mrb[38].mxu0 }
 0x6a8   :  { %v2217_v44 = vpop.f32.mrb[39].mxu0 }
 0x6a9   :  { %v2218_v53 = vadd.f32 %v2217_v44, %v2216_v54 }
 0x6ab   :  { %v1860_v62 = vadd.f32 %v2218_v53, %v1791_v7  ;;  %v2219_v59 = vpop.f32.mrb[40].mxu0 }
 0x6ac   :  { %v2220_v19 = vpop.f32.mrb[41].mxu0 }
 0x6ad   :  { %v1898_v23 = vmul.f32 %v1893_v22, %v1860_v62  ;;  %v2221_v24 = vadd.f32 %v2220_v19, %v2219_v59 }
 0x6af   :  { %v1865_v27 = vadd.f32 %v2221_v24, %v1792_v28  ;;  %2417 = vmatprep.mubr.msk.f32.mxu1 %vm185_vm1, %v1898_v23 }
 0x6b1   :  { %v1899_v13 = vmul.f32 %v1895_v8, %v1865_v27 }
 0x6b3   :  { %2418 = vmatmul.mubr.msk.f32.vlgmr.msra.gmra.mrb[40].mxu1 %vm185_vm1, %v1899_v13 }
 0x786   :  { %v2419_v20 = vpop.f32.mrb[40].mxu1 }
 0x787   :  { %1982 = vst.msk [vmem:[#allocation2 + $0x8] sm:$0xff] %vm73_vm0, %v2419_v20  ;;  %v1972_v14 = vpop.f32.mrb[41].mxu1 }
 0x788   :  { %1981 = vst.msk [vmem:[#allocation2] sm:$0xff] %vm73_vm0, %v1972_v14 }
 0x789   :  { %2652 = shalt.err (!%p2649_p4)
}
 0x78a   :  { %s2653_s17 = scalar_lea.hbm %s3707_s11, 256 }
 0x78b   :  { %p2654_p5 = scmp.ne.s32.totalorder %s3707_s11, %s2653_s17  ;;  %p2657_p6 = scmp.lt.u32.totalorder %s2653_s17, %s3707_s11 }
 0x78d   :  { %p2659_p7 = pnand %p2657_p6, %p2654_p5 }
 0x78f   :  { %2662 = shalt.err (!%p2659_p7)
}
 0x790   :  { %s2670_s8 = smov 128   ;;  %s2671_s20 = smov 8  }
 0x791   :  { %1994 = dma.vmem_to_hbm [thread:$0]  %s1989_s4, 256, %s3707_s11, [#allocation3], %s2670_s8, %s2670_s8, %s2671_s20  }
 0x792   :  { %2663 = dma.done.wait [#allocation3], 256  }
 0x793   :  { %2664 = vsyncadd [#allocation3], 4294967040 }
 0x794   :  { %1998 = vsyncpa [#allocation3], 1 }

</bundles_post_ra>
